<compile_context>
chip_gen: v7x
topology: tpu7x:2x2x1
jax: 0.10.0
libtpu: 0.0.40
codegen_flags: <defaults>
</compile_context>

<pallas_src>
import jax
import jax.numpy as jnp
from jax import lax
from jax.experimental import pallas as pl
from jax.experimental.pallas import tpu as pltpu

_BN_EPS = 1e-5
_POOL_K = 5
_LANE = 128


def _round_up(a: int, b: int) -> int:
    return ((a + b - 1) // b) * b


# ---------------------------------------------------------------------------
# Fused kernel: for a block of `nb` batch rows it computes
#   stage 1 (per pooled position r = 0..3):
#       y1_r = pooled[:, r, :] @ W1f + shift1           (BN1 folded into W1f)
#   stage 2 (2x2 conv as 4 accumulated matmuls):
#       y2   = sum_r bf16(y1_r) @ W2f[r] + shift2       (BN2 folded into W2f)
#   stage 3:
#       out  = bf16(y2) @ Wlf + bias
# Everything stays in vregs/VMEM; no reshapes / relayouts are needed.
# ---------------------------------------------------------------------------
def _aux_head_kernel(pooled_ref, w1_ref, s1_ref, w2_ref, s2_ref, wl_ref, bl_ref,
                     out_ref):
    num_pos = pooled_ref.shape[1]                 # ho * wo == 4 (static)
    w1 = w1_ref[...]                              # (C, 128)   bf16
    s1 = s1_ref[...]                              # (1, 128)   f32

    acc2 = None
    for r in range(num_pos):                      # unrolled, 4 tiny MXU passes
        a1 = pooled_ref[:, r, :]                  # (nb, C)    bf16
        y1 = jnp.dot(a1, w1, preferred_element_type=jnp.float32) + s1  # (nb,128)
        p2 = jnp.dot(y1.astype(jnp.bfloat16), w2_ref[r],
                     preferred_element_type=jnp.float32)               # (nb,768)
        acc2 = p2 if acc2 is None else acc2 + p2

    y2 = acc2 + s2_ref[...]                       # BN2 shift (f32)
    logits = jnp.dot(y2.astype(jnp.bfloat16), wl_ref[...],
                     preferred_element_type=jnp.float32) + bl_ref[...]
    out_ref[...] = logits.astype(out_ref.dtype)


# ---------------------------------------------------------------------------
# One-time parameter preparation (hoisted out of the per-step forward).
# ---------------------------------------------------------------------------
def prepare_params(params):
    # Stage 1: Conv1x1 weight with BN1 scale folded in.
    scale1 = params["g1"] / jnp.sqrt(params["v1"] + _BN_EPS)
    shift1 = params["b1"] - params["m1"] * scale1
    w1f = (params["w1"].T * scale1[None, :]).astype(jnp.bfloat16)      # (C, 128)

    # Stage 2: Conv2x2 weight (O,I,kh,kw) -> (kh*kw, I, O) with BN2 scale folded.
    scale2 = params["g2"] / jnp.sqrt(params["v2"] + _BN_EPS)
    shift2 = params["b2"] - params["m2"] * scale2
    o2, i2, kh, kw = params["w2"].shape
    w2s = params["w2"] * scale2[:, None, None, None]
    w2f = jnp.transpose(w2s, (2, 3, 1, 0)).reshape(kh * kw, i2, o2)
    w2f = w2f.astype(jnp.bfloat16)                                      # (4,128,768)

    # Classifier: lane-pad num_labels to a multiple of 128 for dense stores.
    wl = params["wl"]                                                   # (L, 768)
    num_labels = wl.shape[0]
    lp = _round_up(num_labels, _LANE)
    wlf = jnp.pad(wl.T, ((0, 0), (0, lp - num_labels))).astype(jnp.bfloat16)
    blf = jnp.pad(params["bl"], (0, lp - num_labels)).reshape(1, lp)

    return {
        "w1f": w1f,
        "s1": shift1.reshape(1, -1).astype(jnp.float32),
        "w2f": w2f,
        "s2": shift2.reshape(1, -1).astype(jnp.float32),
        "wlf": wlf,
        "bl": blf.astype(jnp.float32),
    }


# ---------------------------------------------------------------------------
# Forward pass (NCHW input, inference-mode BN, matches the PyTorch module).
# ---------------------------------------------------------------------------
def auxiliary_head_forward(x, prepped, dataset, num_labels):
    if dataset == "imagenet":
        stride = 2
    elif dataset == "cifar":
        stride = 3
    else:
        raise ValueError(dataset)

    n, c, h, w = x.shape
    ho = (h - _POOL_K) // stride + 1
    wo = (w - _POOL_K) // stride + 1
    # Linear(768, L) on the flattened features requires a 1x1 map after the
    # 2x2 conv, i.e. a 2x2 pooled feature map (true for real aux-head inputs).
    assert ho == 2 and wo == 2, "AuxiliaryHead requires a 2x2 pooled feature map"

    # AvgPool(5, stride): cheap VPU reduce in XLA (NOT folded into matmul K).
    pooled = lax.reduce_window(
        x, 0.0, lax.add, (1, 1, _POOL_K, _POOL_K), (1, 1, stride, stride), "VALID"
    ) * (1.0 / float(_POOL_K * _POOL_K))
    pooled = pooled.transpose(0, 2, 3, 1).reshape(n, ho * wo, c)   # (n, 4, C) NHWC

    # Batch blocking: 8 rows per grid step, always >= 2 steps (v7x megacore).
    nb = 8
    n_pad = max(_round_up(n, nb), 2 * nb)
    if n_pad != n:
        pooled = jnp.pad(pooled, ((0, n_pad - n), (0, 0), (0, 0)))
    pooled = pooled.astype(jnp.bfloat16)

    w1f, s1, w2f, s2 = prepped["w1f"], prepped["s1"], prepped["w2f"], prepped["s2"]
    wlf, bl = prepped["wlf"], prepped["bl"]
    lp = wlf.shape[1]

    out = pl.pallas_call(
        _aux_head_kernel,
        out_shape=jax.ShapeDtypeStruct((n_pad, lp), jnp.float32),
        grid=(n_pad // nb,),
        in_specs=[
            pl.BlockSpec((nb, ho * wo, c), lambda i: (i, 0, 0)),
            pl.BlockSpec(w1f.shape, lambda i: (0, 0)),
            pl.BlockSpec(s1.shape, lambda i: (0, 0)),
            pl.BlockSpec(w2f.shape, lambda i: (0, 0, 0)),
            pl.BlockSpec(s2.shape, lambda i: (0, 0)),
            pl.BlockSpec(wlf.shape, lambda i: (0, 0)),
            pl.BlockSpec(bl.shape, lambda i: (0, 0)),
        ],
        out_specs=pl.BlockSpec((nb, lp), lambda i: (i, 0)),
        compiler_params=pltpu.CompilerParams(
            dimension_semantics=("parallel",),
        ),
    )(pooled, w1f, s1, w2f, s2, wlf, bl)

    return out[:n, :num_labels]


# ---------------------------------------------------------------------------
# Pure-JAX reference (XLA conv / reduce_window, f32) for verification.
# ---------------------------------------------------------------------------
def _reference(x, params, dataset):
    stride = 2 if dataset == "imagenet" else 3

    def bn(y, g, b, m, v):
        inv = g / jnp.sqrt(v + _BN_EPS)
        return y * inv[None, :, None, None] + (b - m * inv)[None, :, None, None]

    pooled = lax.reduce_window(
        x, 0.0, lax.add, (1, 1, 5, 5), (1, 1, stride, stride), "VALID"
    ) / 25.0
    y = lax.conv_general_dilated(
        pooled, params["w1"][:, :, None, None], (1, 1), "VALID",
        dimension_numbers=("NCHW", "OIHW", "NCHW"))
    y = bn(y, params["g1"], params["b1"], params["m1"], params["v1"])
    y = lax.conv_general_dilated(
        y, params["w2"], (1, 1), "VALID",
        dimension_numbers=("NCHW", "OIHW", "NCHW"))
    y = bn(y, params["g2"], params["b2"], params["m2"], params["v2"])
    flat = y.reshape(y.shape[0], -1)
    return flat @ params["wl"].T + params["bl"]


if __name__ == "__main__":
    key = jax.random.PRNGKey(0)
    ks = jax.random.split(key, 13)
    N, C, H, W, L = 2, 4, 8, 8, 10

    x = jax.random.normal(ks[0], (N, C, H, W), jnp.float32)
    params = {
        "w1": 0.1 * jax.random.normal(ks[1], (128, C), jnp.float32),
        "g1": 1.0 + 0.1 * jax.random.normal(ks[2], (128,), jnp.float32),
        "b1": 0.1 * jax.random.normal(ks[3], (128,), jnp.float32),
        "m1": 0.1 * jax.random.normal(ks[4], (128,), jnp.float32),
        "v1": 0.5 + jax.random.uniform(ks[5], (128,), jnp.float32),
        "w2": 0.05 * jax.random.normal(ks[6], (768, 128, 2, 2), jnp.float32),
        "g2": 1.0 + 0.1 * jax.random.normal(ks[7], (768,), jnp.float32),
        "b2": 0.1 * jax.random.normal(ks[8], (768,), jnp.float32),
        "m2": 0.1 * jax.random.normal(ks[9], (768,), jnp.float32),
        "v2": 0.5 + jax.random.uniform(ks[10], (768,), jnp.float32),
        "wl": 0.05 * jax.random.normal(ks[11], (L, 768), jnp.float32),
        "bl": 0.1 * jax.random.normal(ks[12], (L,), jnp.float32),
    }

    prepped = prepare_params(params)                      # one-time weight prep
    fwd = jax.jit(auxiliary_head_forward,
                  static_argnames=("dataset", "num_labels"))

    ok = True
    for dataset in ("cifar", "imagenet"):
        out = fwd(x, prepped, dataset=dataset, num_labels=L)
        out = jax.block_until_ready(out)
        ref = _reference(x, params, dataset)
        ok &= out.shape == ref.shape == (N, L)
        # bf16 MXU operands (f32 accumulation) -> compare with a bf16-level tol.
        ok &= bool(jnp.allclose(out, ref, atol=2e-2, rtol=2e-2))

    if ok:
        print("KERNEL_OK")
</pallas_src>

<mosaic_0001>
module attributes {stable_mosaic.version = 11 : i64} {
  func.func @_aux_head_kernel(%arg0: i32, %arg1: memref<8x4x4xbf16, #tpu.memory_space<vmem>>, %arg2: memref<4x128xbf16, #tpu.memory_space<vmem>>, %arg3: memref<1x128xf32, #tpu.memory_space<vmem>>, %arg4: memref<4x128x768xbf16, #tpu.memory_space<vmem>>, %arg5: memref<1x768xf32, #tpu.memory_space<vmem>>, %arg6: memref<768x128xbf16, #tpu.memory_space<vmem>>, %arg7: memref<1x128xf32, #tpu.memory_space<vmem>>, %arg8: memref<8x128xf32, #tpu.memory_space<vmem>>) attributes {dimension_semantics = [#tpu.dimension_semantics<parallel>], iteration_bounds = array<i64: 2>, scalar_prefetch = 0 : i64, scratch_operands = 0 : i64, tpu.core_type = #tpu.core_type<tc>, window_params = [{transform_indices = @transform_0, window_bounds = array<i64: 8, 4, 4>}, {pipeline_mode = #tpu.pipeline_mode<synchronous>, transform_indices = @transform_1, window_bounds = array<i64: 4, 128>}, {pipeline_mode = #tpu.pipeline_mode<synchronous>, transform_indices = @transform_2, window_bounds = array<i64: 1, 128>}, {pipeline_mode = #tpu.pipeline_mode<synchronous>, transform_indices = @transform_3, window_bounds = array<i64: 4, 128, 768>}, {pipeline_mode = #tpu.pipeline_mode<synchronous>, transform_indices = @transform_4, window_bounds = array<i64: 1, 768>}, {pipeline_mode = #tpu.pipeline_mode<synchronous>, transform_indices = @transform_5, window_bounds = array<i64: 768, 128>}, {pipeline_mode = #tpu.pipeline_mode<synchronous>, transform_indices = @transform_6, window_bounds = array<i64: 1, 128>}, {transform_indices = @transform_7, window_bounds = array<i64: 8, 128>}]} {
    %c0 = arith.constant 0 : index
    %c0_0 = arith.constant 0 : index
    %0 = vector.load %arg2[%c0, %c0_0] : memref<4x128xbf16, #tpu.memory_space<vmem>>, vector<4x128xbf16>
    %c0_1 = arith.constant 0 : index
    %c0_2 = arith.constant 0 : index
    %1 = vector.load %arg3[%c0_1, %c0_2] : memref<1x128xf32, #tpu.memory_space<vmem>>, vector<1x128xf32>
    %c0_3 = arith.constant 0 : index
    %c0_4 = arith.constant 0 : index
    %c0_5 = arith.constant 0 : index
    %2 = vector.load %arg1[%c0_3, %c0_4, %c0_5] : memref<8x4x4xbf16, #tpu.memory_space<vmem>>, vector<8x1x4xbf16>
    %3 = vector.shape_cast %2 : vector<8x1x4xbf16> to vector<8x4xbf16>
    %cst = arith.constant dense<0.000000e+00> : vector<8x128xf32>
    %4 = tpu.matmul %3, %0, %cst {dimension_numbers = #tpu.dot_dimension_numbers<[1], [0], [0], [1], [0, 0, 1, 1], [], []>} : vector<8x4xbf16>, vector<4x128xbf16>, vector<8x128xf32> -> vector<8x128xf32>
    %5 = vector.broadcast %1 : vector<1x128xf32> to vector<8x128xf32>
    %6 = arith.addf %4, %5 : vector<8x128xf32>
    %7 = arith.truncf %6 : vector<8x128xf32> to vector<8x128xbf16>
    %c0_6 = arith.constant 0 : index
    %c0_7 = arith.constant 0 : index
    %c0_8 = arith.constant 0 : index
    %8 = vector.load %arg4[%c0_6, %c0_7, %c0_8] : memref<4x128x768xbf16, #tpu.memory_space<vmem>>, vector<1x128x768xbf16>
    %9 = vector.shape_cast %8 : vector<1x128x768xbf16> to vector<128x768xbf16>
    %cst_9 = arith.constant dense<0.000000e+00> : vector<8x768xf32>
    %10 = tpu.matmul %7, %9, %cst_9 {dimension_numbers = #tpu.dot_dimension_numbers<[1], [0], [0], [1], [0, 0, 1, 1], [], []>} : vector<8x128xbf16>, vector<128x768xbf16>, vector<8x768xf32> -> vector<8x768xf32>
    %c0_10 = arith.constant 0 : index
    %c1 = arith.constant 1 : index
    %c0_11 = arith.constant 0 : index
    %11 = vector.load %arg1[%c0_10, %c1, %c0_11] : memref<8x4x4xbf16, #tpu.memory_space<vmem>>, vector<8x1x4xbf16>
    %12 = vector.shape_cast %11 : vector<8x1x4xbf16> to vector<8x4xbf16>
    %cst_12 = arith.constant dense<0.000000e+00> : vector<8x128xf32>
    %13 = tpu.matmul %12, %0, %cst_12 {dimension_numbers = #tpu.dot_dimension_numbers<[1], [0], [0], [1], [0, 0, 1, 1], [], []>} : vector<8x4xbf16>, vector<4x128xbf16>, vector<8x128xf32> -> vector<8x128xf32>
    %14 = vector.broadcast %1 : vector<1x128xf32> to vector<8x128xf32>
    %15 = arith.addf %13, %14 : vector<8x128xf32>
    %16 = arith.truncf %15 : vector<8x128xf32> to vector<8x128xbf16>
    %c1_13 = arith.constant 1 : index
    %c0_14 = arith.constant 0 : index
    %c0_15 = arith.constant 0 : index
    %17 = vector.load %arg4[%c1_13, %c0_14, %c0_15] : memref<4x128x768xbf16, #tpu.memory_space<vmem>>, vector<1x128x768xbf16>
    %18 = vector.shape_cast %17 : vector<1x128x768xbf16> to vector<128x768xbf16>
    %cst_16 = arith.constant dense<0.000000e+00> : vector<8x768xf32>
    %19 = tpu.matmul %16, %18, %cst_16 {dimension_numbers = #tpu.dot_dimension_numbers<[1], [0], [0], [1], [0, 0, 1, 1], [], []>} : vector<8x128xbf16>, vector<128x768xbf16>, vector<8x768xf32> -> vector<8x768xf32>
    %20 = arith.addf %10, %19 : vector<8x768xf32>
    %c0_17 = arith.constant 0 : index
    %c2 = arith.constant 2 : index
    %c0_18 = arith.constant 0 : index
    %21 = vector.load %arg1[%c0_17, %c2, %c0_18] : memref<8x4x4xbf16, #tpu.memory_space<vmem>>, vector<8x1x4xbf16>
    %22 = vector.shape_cast %21 : vector<8x1x4xbf16> to vector<8x4xbf16>
    %cst_19 = arith.constant dense<0.000000e+00> : vector<8x128xf32>
    %23 = tpu.matmul %22, %0, %cst_19 {dimension_numbers = #tpu.dot_dimension_numbers<[1], [0], [0], [1], [0, 0, 1, 1], [], []>} : vector<8x4xbf16>, vector<4x128xbf16>, vector<8x128xf32> -> vector<8x128xf32>
    %24 = vector.broadcast %1 : vector<1x128xf32> to vector<8x128xf32>
    %25 = arith.addf %23, %24 : vector<8x128xf32>
    %26 = arith.truncf %25 : vector<8x128xf32> to vector<8x128xbf16>
    %c2_20 = arith.constant 2 : index
    %c0_21 = arith.constant 0 : index
    %c0_22 = arith.constant 0 : index
    %27 = vector.load %arg4[%c2_20, %c0_21, %c0_22] : memref<4x128x768xbf16, #tpu.memory_space<vmem>>, vector<1x128x768xbf16>
    %28 = vector.shape_cast %27 : vector<1x128x768xbf16> to vector<128x768xbf16>
    %cst_23 = arith.constant dense<0.000000e+00> : vector<8x768xf32>
    %29 = tpu.matmul %26, %28, %cst_23 {dimension_numbers = #tpu.dot_dimension_numbers<[1], [0], [0], [1], [0, 0, 1, 1], [], []>} : vector<8x128xbf16>, vector<128x768xbf16>, vector<8x768xf32> -> vector<8x768xf32>
    %30 = arith.addf %20, %29 : vector<8x768xf32>
    %c0_24 = arith.constant 0 : index
    %c3 = arith.constant 3 : index
    %c0_25 = arith.constant 0 : index
    %31 = vector.load %arg1[%c0_24, %c3, %c0_25] : memref<8x4x4xbf16, #tpu.memory_space<vmem>>, vector<8x1x4xbf16>
    %32 = vector.shape_cast %31 : vector<8x1x4xbf16> to vector<8x4xbf16>
    %cst_26 = arith.constant dense<0.000000e+00> : vector<8x128xf32>
    %33 = tpu.matmul %32, %0, %cst_26 {dimension_numbers = #tpu.dot_dimension_numbers<[1], [0], [0], [1], [0, 0, 1, 1], [], []>} : vector<8x4xbf16>, vector<4x128xbf16>, vector<8x128xf32> -> vector<8x128xf32>
    %34 = vector.broadcast %1 : vector<1x128xf32> to vector<8x128xf32>
    %35 = arith.addf %33, %34 : vector<8x128xf32>
    %36 = arith.truncf %35 : vector<8x128xf32> to vector<8x128xbf16>
    %c3_27 = arith.constant 3 : index
    %c0_28 = arith.constant 0 : index
    %c0_29 = arith.constant 0 : index
    %37 = vector.load %arg4[%c3_27, %c0_28, %c0_29] : memref<4x128x768xbf16, #tpu.memory_space<vmem>>, vector<1x128x768xbf16>
    %38 = vector.shape_cast %37 : vector<1x128x768xbf16> to vector<128x768xbf16>
    %cst_30 = arith.constant dense<0.000000e+00> : vector<8x768xf32>
    %39 = tpu.matmul %36, %38, %cst_30 {dimension_numbers = #tpu.dot_dimension_numbers<[1], [0], [0], [1], [0, 0, 1, 1], [], []>} : vector<8x128xbf16>, vector<128x768xbf16>, vector<8x768xf32> -> vector<8x768xf32>
    %40 = arith.addf %30, %39 : vector<8x768xf32>
    %c0_31 = arith.constant 0 : index
    %c0_32 = arith.constant 0 : index
    %41 = vector.load %arg5[%c0_31, %c0_32] : memref<1x768xf32, #tpu.memory_space<vmem>>, vector<1x768xf32>
    %42 = vector.broadcast %41 : vector<1x768xf32> to vector<8x768xf32>
    %43 = arith.addf %40, %42 : vector<8x768xf32>
    %44 = arith.truncf %43 : vector<8x768xf32> to vector<8x768xbf16>
    %c0_33 = arith.constant 0 : index
    %c0_34 = arith.constant 0 : index
    %45 = vector.load %arg6[%c0_33, %c0_34] : memref<768x128xbf16, #tpu.memory_space<vmem>>, vector<768x128xbf16>
    %cst_35 = arith.constant dense<0.000000e+00> : vector<8x128xf32>
    %46 = tpu.matmul %44, %45, %cst_35 {dimension_numbers = #tpu.dot_dimension_numbers<[1], [0], [0], [1], [0, 0, 1, 1], [], []>} : vector<8x768xbf16>, vector<768x128xbf16>, vector<8x128xf32> -> vector<8x128xf32>
    %c0_36 = arith.constant 0 : index
    %c0_37 = arith.constant 0 : index
    %47 = vector.load %arg7[%c0_36, %c0_37] : memref<1x128xf32, #tpu.memory_space<vmem>>, vector<1x128xf32>
    %48 = vector.broadcast %47 : vector<1x128xf32> to vector<8x128xf32>
    %49 = arith.addf %46, %48 : vector<8x128xf32>
    %c0_38 = arith.constant 0 : index
    %c0_39 = arith.constant 0 : index
    %50 = vector.load %arg8[%c0_38, %c0_39] : memref<8x128xf32, #tpu.memory_space<vmem>>, vector<8x128xf32>
    tpu.vector_store %arg8[%c0_38, %c0_39], %49 {strides = array<i32>} : memref<8x128xf32, #tpu.memory_space<vmem>>, vector<8x128xf32>,
    return
  }
  func.func @transform_0(%arg0: i32) -> (i32, i32, i32) {
    %c0_i32 = arith.constant 0 : i32
    %c0_i32_0 = arith.constant 0 : i32
    %c0_i32_1 = arith.constant 0 : i32
    return %arg0, %c0_i32, %c0_i32_0 : i32, i32, i32
  }
  func.func @transform_1(%arg0: i32) -> (i32, i32) {
    %c0_i32 = arith.constant 0 : i32
    %c0_i32_0 = arith.constant 0 : i32
    %c0_i32_1 = arith.constant 0 : i32
    return %c0_i32, %c0_i32_0 : i32, i32
  }
  func.func @transform_2(%arg0: i32) -> (i32, i32) {
    %c0_i32 = arith.constant 0 : i32
    %c0_i32_0 = arith.constant 0 : i32
    %c0_i32_1 = arith.constant 0 : i32
    return %c0_i32, %c0_i32_0 : i32, i32
  }
  func.func @transform_3(%arg0: i32) -> (i32, i32, i32) {
    %c0_i32 = arith.constant 0 : i32
    %c0_i32_0 = arith.constant 0 : i32
    %c0_i32_1 = arith.constant 0 : i32
    %c0_i32_2 = arith.constant 0 : i32
    return %c0_i32, %c0_i32_0, %c0_i32_1 : i32, i32, i32
  }
  func.func @transform_4(%arg0: i32) -> (i32, i32) {
    %c0_i32 = arith.constant 0 : i32
    %c0_i32_0 = arith.constant 0 : i32
    %c0_i32_1 = arith.constant 0 : i32
    return %c0_i32, %c0_i32_0 : i32, i32
  }
  func.func @transform_5(%arg0: i32) -> (i32, i32) {
    %c0_i32 = arith.constant 0 : i32
    %c0_i32_0 = arith.constant 0 : i32
    %c0_i32_1 = arith.constant 0 : i32
    return %c0_i32, %c0_i32_0 : i32, i32
  }
  func.func @transform_6(%arg0: i32) -> (i32, i32) {
    %c0_i32 = arith.constant 0 : i32
    %c0_i32_0 = arith.constant 0 : i32
    %c0_i32_1 = arith.constant 0 : i32
    return %c0_i32, %c0_i32_0 : i32, i32
  }
  func.func @transform_7(%arg0: i32) -> (i32, i32) {
    %c0_i32 = arith.constant 0 : i32
    %c0_i32_0 = arith.constant 0 : i32
    return %arg0, %c0_i32 : i32, i32
  }
}

</mosaic_0001>

<bundles_post_ra>
// kernel: auxiliary_head_forward.1
= control target key start
LH: loop header
LB: loop body
LE: loop exit
PB: predicated region body
PF: predicated region fallthrough
CT: control target
= control target key end

     0   :  { %12 = vsyncpa [#allocation3], 0  ;;  %s4374_s0 = inlined_call_operand.vmem [shape: bf16[16,4,4], index: 0, kind: input, shape index: {}]   ;;  %s4375_s1 = inlined_call_operand.vmem [shape: bf16[4,128], index: 1, kind: input, shape index: {}]   ;;  %s4376_s2 = inlined_call_operand.vmem [shape: f32[1,128], index: 2, kind: input, shape index: {}]   ;;  %s4377_s3 = inlined_call_operand.hbm [shape: bf16[4,128,768], index: 3, kind: input, shape index: {}]   ;;  %s4378_s4 = inlined_call_operand.vmem [shape: f32[1,768], index: 4, kind: input, shape index: {}]   ;;  %s4379_s5 = inlined_call_operand.hbm [shape: bf16[768,128], index: 5, kind: input, shape index: {}]   ;;  %s4380_s6 = inlined_call_operand.vmem [shape: f32[1,128], index: 6, kind: input, shape index: {}]   ;;  %s4381_s7 = inlined_call_operand.vmem [shape: f32[16,128], index: 7, kind: output, shape index: {}]  }
   0x1   :  { %13 = vsyncpa [#allocation5], 0  ;;  %s4059_s24 = smov 0  }
   0x2 LB: > { %s4010_s25 = smov [#allocation2]   ;;  %s4065_s27 = sadd.s32 4294967295, %s4008_s24   ;;  %s4008_s24 = sphi %s4059_s24, %s19_s24  }
   0x3   : > { %s220_s26 = sshll.u32 %s4010_s25, 4  ;;  %p3178_p0 = scmp.ge.s32.totalorder %s4008_s24, 1  ;;  %s221_s26 = int_to_ptr.vmem [resolvable:$true] %s220_s26 }
   0x4   : > { %p202_p1 = scmp.lt.s32.totalorder %s4008_s24, 3  ;;  %p4382_p3 = scmp.eq.s32.totalorder %s4065_s27, 0 }
   0x5   : > { %s4011_s29 = smov [#allocation4]   ;;  %s3938_s11 = scalar_lea.hbm %s4377_s3, 24576 }
   0x6   : > { %p4069_p2 = pnand %p3178_p0, %p202_p1  ;;  %s236_s30 = sshll.u32 %s4011_s29, 4  ;;  %s4082_s30 = int_to_ptr.vmem [resolvable:$true] %s236_s30 }
   0x7   : > { %p3939_p6 = scmp.ne.s32.totalorder %s4377_s3, %s3938_s11  ;;  %p3945_p10 = scmp.lt.u32.totalorder %s3938_s11, %s4377_s3 }
   0x8   : > { %s4384_s28 = scalar_select %p4069_p2, 1, 0 }
   0x9   : > { %p3574_p4 = pneg %p4069_p2 }
   0xb   : > { %p4078_p5 = pnand %p4382_p3, %p3574_p4 }
   0xd   : > { %p3940_p7 = pneg %p4078_p5 }
   0xf   : > { %p3941_p8 = pnand %p3940_p7, %p3939_p6 }
  0x11   : > { %p3942_p9 = pneg %p3941_p8 }
  0x13   : > { %p3947_p11 = pnand %p3945_p10, %p3942_p9 }
  0x15   : > { %3950 = shalt.err (!%p3947_p11)
}
  0x16   : > { %s3951_s16 = scalar_lea.vmem %s221_s26, 24576  ;;  %p3959_p1 = scmp.lt.s32.totalorder %s221_s26, %s221_s26 }
  0x17   : > { %p3952_p12 = scmp.ne.s32.totalorder %s221_s26, %s3951_s16  ;;  %p3960_p4 = scmp.lt.s32.totalorder %s3951_s16, %s3951_s16 }
  0x19   : > { %p3954_p13 = pnand %p3952_p12, %p3940_p7  ;;  %p3961_p3 = por %p3960_p4, %p3959_p1 }
  0x1b   : > { %p3955_p0 = pneg %p3954_p13 }
  0x1d   : > { %p3962_p2 = pnand %p3961_p3, %p3955_p0 }
  0x1f   : > { %3965 = shalt.err (!%p3962_p2)
}
  0x20   : > { %s4012_s17 = smov 384   ;;  %s4013_s18 = smov 24  }
  0x21   : > { %3577 = dma.hbm_to_vmem [thread:$0]  (!%p4078_p5), %s4377_s3, 24576, %s221_s26, [#allocation3], %s4012_s17, %s4012_s17, %s4013_s18  }
  0x22   : > { %s3966_s23 = scalar_lea.hbm %s4379_s5, 6144 }
  0x23   : > { %p3967_p6 = scmp.ne.s32.totalorder %s4379_s5, %s3966_s23  ;;  %p3973_p8 = scmp.lt.u32.totalorder %s3966_s23, %s4379_s5 }
  0x25   : > { %p3969_p2 = pnand %p3967_p6, %p3940_p7 }
  0x27   : > { %p3970_p3 = pneg %p3969_p2 }
  0x29   : > { %p3975_p9 = pnand %p3973_p8, %p3970_p3 }
  0x2b   : > { %3978 = shalt.err (!%p3975_p9)
}
  0x2c   : > { %s3979_s26 = scalar_lea.vmem %s4082_s30, 6144  ;;  %p3987_p13 = scmp.lt.s32.totalorder %s4082_s30, %s4082_s30 }
  0x2d   : > { %p3980_p10 = scmp.ne.s32.totalorder %s4082_s30, %s3979_s26  ;;  %p3988_p0 = scmp.lt.s32.totalorder %s3979_s26, %s3979_s26 }
  0x2f   : > { %p3982_p11 = pnand %p3980_p10, %p3940_p7  ;;  %p3989_p1 = por %p3988_p0, %p3987_p13 }
  0x31   : > { %p3983_p12 = pneg %p3982_p11 }
  0x33   : > { %p3990_p4 = pnand %p3989_p1, %p3983_p12 }
  0x35   : > { %3993 = shalt.err (!%p3990_p4)
}
  0x36   : > { %s4014_s11 = smov 64   ;;  %s4015_s12 = smov 4  }
  0x37   : > { %3580 = dma.hbm_to_vmem [thread:$0]  (!%p4078_p5), %s4379_s5, 6144, %s4082_s30, [#allocation5], %s4014_s11, %s4014_s11, %s4015_s12  }
  0x38   : > { %p4386_p6 = scmp.ne.s32.totalorder %s4384_s28, 0 }
  0x39   : > { %p4387_p7 = scmp.eq.s32.totalorder (!%p4386_p6), %s4065_s27, 0 }
  0x3a   : > { %264 = sbr.rel (%p4386_p6) target bundleno = 1297 (0x511), region = 48 }
  0x41   : > { %3999 = dma.done.wait (%p4387_p7), [#allocation3], 24576   ;;  %p4388_p2 = pmov %p4387_p7 }
  0x43   : > { %4001 = vsyncadd (%p4388_p2), [#allocation3], 4294942720  ;;  %p4389_p3 = pmov %p4388_p2 }
  0x44   : > { %p4390_p8 = pmov %p4388_p2 }
  0x45   : > { %4003 = dma.done.wait (%p4389_p3), [#allocation5], 6144  }
  0x46   : > { %4005 = vsyncadd (%p4390_p8), [#allocation5], 4294961152  ;;  %s3185_s8 = sshll.u32 %s4065_s27, 3  ;;  %v4016_v0 = vmov 0.0   ;;  %vm4017_vm0 = vmmov 0   ;;  %vm424_vm1 = vcmask 1041408  }
  0x47   : > { %3542 = vmatprep.subr.bf16.mxu0 %v4016_v0  ;;  %3544 = vmatprep.mubr.msk.bf16.mxu0 %vm4017_vm0, %v4016_v0  ;;  %p300_p5 = scmp.lt.s32.totalorder %s3185_s8, 15  ;;  %vm399_vm2 = vcmask 1041409   ;;  %vm402_vm3 = vcmask 1042434   ;;  %vm405_vm4 = vcmask 1043459   ;;  %vm408_vm5 = vcmask 1044484   ;;  %p305_p9 = scmp.lt.s32.totalorder %s4065_s27, 1 }
  0x48   : > { %vm411_vm6 = vcmask 1045509   ;;  %v310_v1 = vld [vmem:[%s4375_s1] sm:$0x3]  ;;  %vm414_vm7 = vcmask 1046534   ;;  %vm417_vm8 = vcmask 1047559   ;;  %vm420_vm9 = vcmask 31744  }
  0x49   : > { %s4392_s8 = smov (!%p300_p5, %s3185_s8), 15  ;;  %v4154_v3 = vsel %vm424_vm1, %v310_v1, 0  ;;  %v3605_v37 = vld [vmem:[#allocation2 + $0x18c] ss:$24 sps:$4 sm:$0xff]   ;;  %v3607_v41 = vld [vmem:[#allocation2 + $0x188] ss:$24 sps:$4 sm:$0xff]  }
  0x4a   : > { %s3186_s28 = sshll.u32 %s4392_s8, 1  ;;  %3543 = vmatpush3.bf16.msra.mxu0 %v4154_v3  ;;  %986 = vmatprep.subr.bf16.mxu1 %v3605_v37  ;;  %v3611_v44 = vld [vmem:[#allocation2 + $0x1bc] ss:$24 sps:$4 sm:$0xff]   ;;  %v3613_v51 = vld [vmem:[#allocation2 + $0x1b8] ss:$24 sps:$4 sm:$0xff]   ;;  %s4394_s27 = smov (!%p305_p9, %s4065_s27), 1 }
  0x4b   : > { %s4148_s16 = scalar_lea.vmem %s4374_s0, %s3186_s28  ;;  %3548 = vmatprep.subr.bf16.mxu0 %v4016_v0  ;;  %v3604_v48 = vld [vmem:[#allocation2 + $0x184] ss:$24 sps:$4 sm:$0xff]   ;;  %987 = vmatpush1.bf16.msra.mxu1 %v3607_v41  ;;  %v3619_v54 = vld [vmem:[#allocation2 + $0x1e8] ss:$24 sps:$4 sm:$0xff]   ;;  %v3610_v58 = vld [vmem:[#allocation2 + $0x1b4] ss:$24 sps:$4 sm:$0xff]  }
  0x4c   : > { %v3189_v2 = vld.sshfl [vmem:[%s4148_s16] sm:$0x1 pattern:$0x76325410]  ;;  %988 = vmatprep.subr.bf16.mxu1 %v3611_v44  ;;  %v3617_v52 = vld [vmem:[#allocation2 + $0x1ec] ss:$24 sps:$4 sm:$0xff]  }
  0x4d   : > { %v3190_v4 = vld.sshfl [vmem:[%s4148_s16 + $0x2] sm:$0x1 pattern:$0x76325410]  ;;  %v390_v5 = vunpack.c.l.b16 %v3189_v2  ;;  %v3623_v56 = vld [vmem:[#allocation2 + $0x21c] ss:$24 sps:$4 sm:$0xff]  }
  0x4e   : > { %v3191_v6 = vld.sshfl [vmem:[%s4148_s16 + $0x4] sm:$0x1 pattern:$0x76325410]  ;;  %v391_v7 = vunpack.c.l.b16 %v3190_v4  ;;  %v3602_v55 = vld [vmem:[#allocation2 + $0x180] ss:$24 sps:$4 sm:$0xff]  }
  0x4f   : > { %v3192_v8 = vld.sshfl [vmem:[%s4148_s16 + $0x6] sm:$0x1 pattern:$0x76325410]  ;;  %v392_v9 = vunpack.c.l.b16 %v3191_v6  ;;  %v597_v10 = vrot.slane %v390_v5, 1  ;;  %989 = vmatpush1.bf16.msra.mxu1 %v3613_v51  ;;  %s3187_s29 = sshll.u32 %s4394_s27, 3 }
  0x50   : > { %v3193_v11 = vld.sshfl [vmem:[%s4148_s16 + $0x8] sm:$0x1 pattern:$0x76325410]  ;;  %v393_v12 = vunpack.c.l.b16 %v3192_v8  ;;  %v398_v13 = vrot.slane %v391_v7, 7  ;;  %990 = vmatprep.subr.bf16.mxu1 %v3617_v52  ;;  %s308_s26 = scalar_lea.vmem %s4381_s7, %s3187_s29 }
  0x51   : > { %v3194_v14 = vld.sshfl [vmem:[%s4148_s16 + $0xa] sm:$0x1 pattern:$0x76325410]  ;;  %v394_v15 = vunpack.c.l.b16 %v3193_v11  ;;  %v401_v16 = vrot.slane %v392_v9, 6  ;;  %v598_v17 = vsel %vm399_vm2, %v391_v7, %v597_v10  ;;  %v599_v18 = vrot.slane %v392_v9, 7 }
  0x52   : > { %v3195_v19 = vld.sshfl [vmem:[%s4148_s16 + $0xc] sm:$0x1 pattern:$0x76325410]  ;;  %v395_v20 = vunpack.c.l.b16 %v3194_v14  ;;  %v400_v21 = vsel %vm399_vm2, %v398_v13, %v390_v5  ;;  %v404_v22 = vrot.slane %v393_v12, 5  ;;  %v601_v23 = vrot.slane %v393_v12, 6 }
  0x53   : > { %v3196_v24 = vld.sshfl [vmem:[%s4148_s16 + $0xe] sm:$0x1 pattern:$0x76325410]  ;;  %v396_v25 = vunpack.c.l.b16 %v3195_v19  ;;  %v403_v26 = vsel %vm402_vm3, %v401_v16, %v400_v21  ;;  %v407_v27 = vrot.slane %v394_v15, 4  ;;  %v600_v28 = vsel %vm402_vm3, %v599_v18, %v598_v17  ;;  %991 = vmatpush1.bf16.msra.mxu1 %v3619_v54 }
  0x54   : > { %v397_v29 = vunpack.c.l.b16 %v3196_v24  ;;  %v406_v30 = vsel %vm405_vm4, %v404_v22, %v403_v26  ;;  %v410_v31 = vrot.slane %v395_v20, 3  ;;  %v602_v32 = vsel %vm405_vm4, %v601_v23, %v600_v28  ;;  %v3625_v59 = vld [vmem:[#allocation2 + $0x218] ss:$24 sps:$4 sm:$0xff]   ;;  %v3629_v60 = vld [vmem:[#allocation2 + $0x24c] ss:$24 sps:$4 sm:$0xff]   ;;  %992 = vmatprep.subr.bf16.mxu1 %v3623_v56 }
  0x55   : > { %v409_v33 = vsel %vm408_vm5, %v407_v27, %v406_v30  ;;  %v413_v34 = vrot.slane %v396_v25, 2  ;;  %v603_v35 = vrot.slane %v394_v15, 5  ;;  %v605_v36 = vrot.slane %v395_v20, 4  ;;  %v3608_v61 = vld [vmem:[#allocation2 + $0x1b0] ss:$24 sps:$4 sm:$0xff]  }
  0x56   : > { %v412_v38 = vsel %vm411_vm6, %v410_v31, %v409_v33  ;;  %v416_v39 = vrot.slane %v397_v29, 1  ;;  %v607_v40 = vrot.slane %v396_v25, 3  ;;  %v609_v47 = vrot.slane %v397_v29, 2  ;;  %v3616_v62 = vld [vmem:[#allocation2 + $0x1e4] ss:$24 sps:$4 sm:$0xff]  }
  0x57   : > { %v415_v42 = vsel %vm414_vm7, %v413_v34, %v412_v38  ;;  %v604_v43 = vsel %vm408_vm5, %v603_v35, %v602_v32  ;;  %v3631_v63 = vld [vmem:[#allocation2 + $0x248] ss:$24 sps:$4 sm:$0xff]   ;;  %993 = vmatpush1.bf16.msra.mxu1 %v3625_v59  ;;  %v3622_v2 = vld [vmem:[#allocation2 + $0x214] ss:$24 sps:$4 sm:$0xff]   ;;  %v3628_v5 = vld [vmem:[#allocation2 + $0x244] ss:$24 sps:$4 sm:$0xff]  }
  0x58   : > { %v418_v45 = vsel %vm417_vm8, %v416_v39, %v415_v42  ;;  %v606_v46 = vsel %vm411_vm6, %v605_v36, %v604_v43  ;;  %v3614_v1 = vld [vmem:[#allocation2 + $0x1e0] ss:$24 sps:$4 sm:$0xff]   ;;  %994 = vmatprep.subr.bf16.mxu1 %v3629_v60  ;;  %v3620_v4 = vld [vmem:[#allocation2 + $0x210] ss:$24 sps:$4 sm:$0xff]   ;;  %v3634_v7 = vld [vmem:[#allocation2 + $0x274] ss:$24 sps:$4 sm:$0xff]  }
  0x59   : > { %v419_v49 = vpack.c.b16 %v418_v45, %v418_v45  ;;  %v608_v50 = vsel %vm414_vm7, %v607_v40, %v606_v46  ;;  %v3626_v6 = vld [vmem:[#allocation2 + $0x240] ss:$24 sps:$4 sm:$0xff]   ;;  %v3635_v8 = vld [vmem:[#allocation2 + $0x27c] ss:$24 sps:$4 sm:$0xff]   ;;  %v3632_v9 = vld [vmem:[#allocation2 + $0x270] ss:$24 sps:$4 sm:$0xff]  }
  0x5a   : > { %v610_v53 = vsel %vm417_vm8, %v609_v47, %v608_v50  ;;  %v3637_v10 = vld [vmem:[#allocation2 + $0x278] ss:$24 sps:$4 sm:$0xff]   ;;  %v3640_v11 = vld [vmem:[#allocation2 + $0x2a4] ss:$24 sps:$4 sm:$0xff]   ;;  %v3643_v14 = vld [vmem:[#allocation2 + $0x2a8] ss:$24 sps:$4 sm:$0xff]  }
  0x5b   : > { %3545 = vmatmul.mubr.msk.bf16.vlgmr.msra.gmra.mrb[0].mxu0 %vm420_vm9, %v419_v49  ;;  %v611_v57 = vpack.c.b16 %v610_v53, %v610_v53  ;;  %995 = vmatpush1.bf16.msra.mxu1 %v3631_v63  ;;  %v3641_v12 = vld [vmem:[#allocation2 + $0x2ac] ss:$24 sps:$4 sm:$0xff]   ;;  %v3638_v13 = vld [vmem:[#allocation2 + $0x2a0] ss:$24 sps:$4 sm:$0xff]   ;;  %v3647_v16 = vld [vmem:[#allocation2 + $0x2dc] ss:$24 sps:$4 sm:$0xff]  }
  0x5c   : > { %3549 = vmatpush3.bf16.msra.mxu0 %v4154_v3  ;;  %3550 = vmatprep.mubr.msk.bf16.mxu0 %vm4017_vm0, %v4016_v0  ;;  %v3646_v15 = vld [vmem:[#allocation2 + $0x2d4] ss:$24 sps:$4 sm:$0xff]   ;;  %v3644_v17 = vld [vmem:[#allocation2 + $0x2d0] ss:$24 sps:$4 sm:$0xff]   ;;  %v3655_v20 = vld [vmem:[#allocation2 + $0x4] ss:$24 sps:$4 sm:$0xff]  }
  0x5d   : > { %945 = vmatprep.subr.bf16.mxu0 %v3604_v48  ;;  %996 = vmatprep.subr.bf16.mxu1 %v3635_v8  ;;  %v3649_v18 = vld [vmem:[#allocation2 + $0x2d8] ss:$24 sps:$4 sm:$0xff]   ;;  %v3652_v19 = vld [vmem:[#allocation2 + $0x194] ss:$24 sps:$4 sm:$0xff]   ;;  %v4018_v21 = vmov 0  }
  0x5e   : > { %1018 = vmatprep.mubr.bf16.mxu1 %v4018_v21  ;;  %v4191_v26 = vld [vmem:[%s4376_s2] ss:$0 sm:$0xff]  ;;  %v3650_v31 = vld [vmem:[#allocation2 + $0x190] ss:$24 sps:$4 sm:$0xff]   ;;  %v3658_v35 = vld [vmem:[#allocation2 + $0x1c4] ss:$24 sps:$4 sm:$0xff]  }
  0x5f   : > { %997 = vmatpush1.bf16.msra.mxu1 %v3637_v10  ;;  %v3653_v32 = vld [vmem:[#allocation2] ss:$24 sps:$4 sm:$0xff]   ;;  %v3661_v36 = vld [vmem:[#allocation2 + $0x34] ss:$24 sps:$4 sm:$0xff]   ;;  %v3659_v38 = vld [vmem:[#allocation2 + $0x30] ss:$24 sps:$4 sm:$0xff]  }
  0x60   : > { %998 = vmatprep.subr.bf16.mxu1 %v3641_v12  ;;  %v3656_v37 = vld [vmem:[#allocation2 + $0x1c0] ss:$24 sps:$4 sm:$0xff]   ;;  %v3664_v39 = vld [vmem:[#allocation2 + $0x1f4] ss:$24 sps:$4 sm:$0xff]   ;;  %v3667_v40 = vld [vmem:[#allocation2 + $0x64] ss:$24 sps:$4 sm:$0xff]  }
  0x61   : > { %v3662_v41 = vld [vmem:[#allocation2 + $0x1f0] ss:$24 sps:$4 sm:$0xff]   ;;  %v3665_v42 = vld [vmem:[#allocation2 + $0x60] ss:$24 sps:$4 sm:$0xff]   ;;  %v3670_v43 = vld [vmem:[#allocation2 + $0x224] ss:$24 sps:$4 sm:$0xff]  }
  0x62   : > { %v3673_v44 = vld [vmem:[#allocation2 + $0x94] ss:$24 sps:$4 sm:$0xff]   ;;  %v3668_v45 = vld [vmem:[#allocation2 + $0x220] ss:$24 sps:$4 sm:$0xff]   ;;  %v3671_v46 = vld [vmem:[#allocation2 + $0x90] ss:$24 sps:$4 sm:$0xff]  }
  0x63   : > { %3551 = vmatmul.mubr.msk.bf16.vlgmr.msra.gmra.mrb[4].mxu0 %vm420_vm9, %v611_v57  ;;  %999 = vmatpush1.bf16.msra.mxu1 %v3643_v14  ;;  %v3676_v47 = vld [vmem:[#allocation2 + $0x254] ss:$24 sps:$4 sm:$0xff]   ;;  %v3679_v48 = vld [vmem:[#allocation2 + $0xc4] ss:$24 sps:$4 sm:$0xff]   ;;  %v3674_v49 = vld [vmem:[#allocation2 + $0x250] ss:$24 sps:$4 sm:$0xff]  }
  0x64   : > { %946 = vmatpush1.bf16.msra.mxu0 %v3602_v55  ;;  %1000 = vmatprep.subr.bf16.mxu1 %v3647_v16  ;;  %v3677_v50 = vld [vmem:[#allocation2 + $0xc0] ss:$24 sps:$4 sm:$0xff]   ;;  %v3682_v51 = vld [vmem:[#allocation2 + $0x284] ss:$24 sps:$4 sm:$0xff]   ;;  %v3685_v52 = vld [vmem:[#allocation2 + $0xf4] ss:$24 sps:$4 sm:$0xff]  }
  0x65   : > { %947 = vmatprep.subr.bf16.mxu0 %v3610_v58  ;;  %977 = vmatprep.mubr.bf16.mxu0 %v4018_v21  ;;  %v3680_v53 = vld [vmem:[#allocation2 + $0x280] ss:$24 sps:$4 sm:$0xff]   ;;  %v3683_v54 = vld [vmem:[#allocation2 + $0xf0] ss:$24 sps:$4 sm:$0xff]   ;;  %v3688_v55 = vld [vmem:[#allocation2 + $0x2b4] ss:$24 sps:$4 sm:$0xff]  }
  0x66   : > { %v3691_v56 = vld [vmem:[#allocation2 + $0x124] ss:$24 sps:$4 sm:$0xff]   ;;  %v3686_v57 = vld [vmem:[#allocation2 + $0x2b0] ss:$24 sps:$4 sm:$0xff]   ;;  %v3689_v58 = vld [vmem:[#allocation2 + $0x120] ss:$24 sps:$4 sm:$0xff]  }
  0x67   : > { %1001 = vmatpush1.bf16.msra.mxu1 %v3649_v18  ;;  %v3694_v59 = vld [vmem:[#allocation2 + $0x2e4] ss:$24 sps:$4 sm:$0xff]   ;;  %v3697_v60 = vld [vmem:[#allocation2 + $0x154] ss:$24 sps:$4 sm:$0xff]   ;;  %v3707_v10 = vld [vmem:[#allocation2 + $0x40] ss:$24 sps:$4 sm:$0xff]  }
  0x68   : > { %948 = vmatpush1.bf16.msra.mxu0 %v3608_v61  ;;  %1308 = vmatprep.subr.bf16.mxu1 %v3655_v20  ;;  %v3692_v61 = vld [vmem:[#allocation2 + $0x2e0] ss:$24 sps:$4 sm:$0xff]   ;;  %v3709_v8 = vld [vmem:[#allocation2 + $0x44] ss:$24 sps:$4 sm:$0xff]   ;;  %v3715_v12 = vld [vmem:[#allocation2 + $0x74] ss:$24 sps:$4 sm:$0xff]  }
  0x69   : > { %949 = vmatprep.subr.bf16.mxu0 %v3616_v62  ;;  %v3695_v62 = vld [vmem:[#allocation2 + $0x150] ss:$24 sps:$4 sm:$0xff]   ;;  %v4212_v14 = vld.sshfl [vmem:[%s4148_s16 + $0x2] sm:$0x2 pattern:$0x76325410] }
  0x6a   : > { %v3713_v16 = vld [vmem:[#allocation2 + $0x70] ss:$24 sps:$4 sm:$0xff]   ;;  %v3721_v18 = vld [vmem:[#allocation2 + $0xa4] ss:$24 sps:$4 sm:$0xff]   ;;  %v1504_v20 = vunpack.c.l.b16 %v4212_v14 }
  0x6c   : > { %950 = vmatpush1.bf16.msra.mxu0 %v3614_v1  ;;  %v3700_v1 = vld [vmem:[#allocation2 + $0xc] ss:$24 sps:$4 sm:$0xff]  }
  0x6d   : > { %951 = vmatprep.subr.bf16.mxu0 %v3622_v2  ;;  %v3703_v2 = vld [vmem:[#allocation2 + $0x14] ss:$24 sps:$4 sm:$0xff]  }
  0x70   : > { %952 = vmatpush1.bf16.msra.mxu0 %v3620_v4  ;;  %v3698_v4 = vld [vmem:[#allocation2 + $0x8] ss:$24 sps:$4 sm:$0xff]  }
  0x71   : > { %953 = vmatprep.subr.bf16.mxu0 %v3628_v5  ;;  %v3701_v5 = vld [vmem:[#allocation2 + $0x10] ss:$24 sps:$4 sm:$0xff]  }
  0x74   : > { %954 = vmatpush1.bf16.msra.mxu0 %v3626_v6 }
  0x75   : > { %955 = vmatprep.subr.bf16.mxu0 %v3634_v7  ;;  %v3706_v7 = vld [vmem:[#allocation2 + $0x3c] ss:$24 sps:$4 sm:$0xff]  }
  0x78   : > { %956 = vmatpush1.bf16.msra.mxu0 %v3632_v9  ;;  %v3704_v9 = vld [vmem:[#allocation2 + $0x38] ss:$24 sps:$4 sm:$0xff]  }
  0x79   : > { %957 = vmatprep.subr.bf16.mxu0 %v3640_v11  ;;  %v3712_v11 = vld [vmem:[#allocation2 + $0x6c] ss:$24 sps:$4 sm:$0xff]  }
  0x7c   : > { %958 = vmatpush1.bf16.msra.mxu0 %v3638_v13  ;;  %v4209_v13 = vld.sshfl [vmem:[%s4148_s16] sm:$0x2 pattern:$0x76325410] }
  0x7d   : > { %959 = vmatprep.subr.bf16.mxu0 %v3646_v15  ;;  %v3710_v15 = vld [vmem:[#allocation2 + $0x68] ss:$24 sps:$4 sm:$0xff]  }
  0x80   : > { %960 = vmatpush1.bf16.msra.mxu0 %v3644_v17  ;;  %v3718_v17 = vld [vmem:[#allocation2 + $0x9c] ss:$24 sps:$4 sm:$0xff]  }
  0x81   : > { %1027 = vmatprep.subr.bf16.mxu0 %v3652_v19  ;;  %v1503_v19 = vunpack.c.l.b16 %v4209_v13 }
 0x12e   : > { %v4186_v22 = vpop.f32.mrb[0].mxu0 }
 0x12f   : > { %v3546_v23 = vpop.f32.mrb[1].mxu0  ;;  %v463_v63 = vadd.f32 %v4191_v26, %v4186_v22  ;;  %v3716_v22 = vld [vmem:[#allocation2 + $0x98] ss:$24 sps:$4 sm:$0xff]  }
 0x130   : > { %v465_v24 = vpop.f32.mrb[2].mxu0  ;;  %v3719_v23 = vld [vmem:[#allocation2 + $0xa0] ss:$24 sps:$4 sm:$0xff]  }
 0x131   : > { %v3547_v25 = vpop.f32.mrb[3].mxu0  ;;  %v4202_v6 = vpack.c.bf16 %v463_v63, %v463_v63  ;;  %v3724_v24 = vld [vmem:[#allocation2 + $0xcc] ss:$24 sps:$4 sm:$0xff]  }
 0x132   : > { %v3727_v25 = vld [vmem:[#allocation2 + $0xd4] ss:$24 sps:$4 sm:$0xff]  }
 0x136   : > { %v649_v27 = vpop.f32.mrb[4].mxu0 }
 0x137   : > { %v650_v28 = vadd.f32 %v4191_v26, %v649_v27  ;;  %v3552_v29 = vpop.f32.mrb[5].mxu0  ;;  %v4217_v27 = vld.sshfl [vmem:[%s4148_s16 + $0x6] sm:$0x2 pattern:$0x76325410] }
 0x138   : > { %v652_v30 = vpop.f32.mrb[6].mxu0  ;;  %v1511_v29 = vrot.slane %v1503_v19, 2 }
 0x139   : > { %v4194_v33 = vpack.c.bf16 %v650_v28, %v650_v28  ;;  %v3553_v34 = vpop.f32.mrb[7].mxu0  ;;  %v4220_v28 = vld.sshfl [vmem:[%s4148_s16 + $0x4] sm:$0x2 pattern:$0x76325410]  ;;  %v1512_v30 = vrot.slane %v1504_v20, 1 }
 0x13a   : > { %v1506_v34 = vunpack.c.l.b16 %v4217_v27  ;;  %v3794_v27 = vld [vmem:[#allocation2 + $0x310] ss:$24 sps:$4 sm:$0xff]  }
 0x13b   : > { %978 = vmatmul.mubr.bf16.vlgmr.msra.gmra.mrb[8].mxu0 %v4194_v33  ;;  %1019 = vmatmul.mubr.bf16.vlgmr.msra.gmra.mrb[0].mxu1 %v4194_v33 }
 0x13c   : > { %1028 = vmatpush1.bf16.msra.mxu0 %v3650_v31  ;;  %1309 = vmatpush1.bf16.msra.mxu1 %v3653_v32  ;;  %v3722_v31 = vld [vmem:[#allocation2 + $0xc8] ss:$24 sps:$4 sm:$0xff]  }
 0x13d   : > { %1029 = vmatprep.subr.bf16.mxu0 %v3658_v35  ;;  %1310 = vmatprep.subr.bf16.mxu1 %v3661_v36  ;;  %v3725_v32 = vld [vmem:[#allocation2 + $0xd0] ss:$24 sps:$4 sm:$0xff]   ;;  %v3730_v35 = vld [vmem:[#allocation2 + $0xfc] ss:$24 sps:$4 sm:$0xff]  }
 0x13e   : > { %1059 = vmatprep.mubr.bf16.mxu0 %v4018_v21  ;;  %1340 = vmatprep.mubr.bf16.mxu1 %v4018_v21  ;;  %v3733_v36 = vld [vmem:[#allocation2 + $0x104] ss:$24 sps:$4 sm:$0xff]  }
 0x140   : > { %1030 = vmatpush1.bf16.msra.mxu0 %v3656_v37  ;;  %1311 = vmatpush1.bf16.msra.mxu1 %v3659_v38  ;;  %v1505_v37 = vunpack.c.l.b16 %v4220_v28  ;;  %v1513_v38 = vsel %vm399_vm2, %v1512_v30, %v1511_v29  ;;  %v3767_v29 = vld [vmem:[#allocation2 + $0x398] ss:$24 sps:$4 sm:$0xff]   ;;  %v3772_v30 = vld [vmem:[#allocation2 + $0x3c4] ss:$24 sps:$4 sm:$0xff]  }
 0x141   : > { %1031 = vmatprep.subr.bf16.mxu0 %v3664_v39  ;;  %1312 = vmatprep.subr.bf16.mxu1 %v3667_v40  ;;  %v4233_v39 = vld.sshfl [vmem:[%s4148_s16 + $0xa] sm:$0x2 pattern:$0x76325410] }
 0x144   : > { %1032 = vmatpush1.bf16.msra.mxu0 %v3662_v41  ;;  %1313 = vmatpush1.bf16.msra.mxu1 %v3665_v42  ;;  %v3728_v41 = vld [vmem:[#allocation2 + $0xf8] ss:$24 sps:$4 sm:$0xff]  }
 0x145   : > { %1033 = vmatprep.subr.bf16.mxu0 %v3670_v43  ;;  %1314 = vmatprep.subr.bf16.mxu1 %v3673_v44  ;;  %v3731_v42 = vld [vmem:[#allocation2 + $0x100] ss:$24 sps:$4 sm:$0xff]   ;;  %v1515_v43 = vrot.slane %v1506_v34, 7  ;;  %v3736_v44 = vld [vmem:[#allocation2 + $0x12c] ss:$24 sps:$4 sm:$0xff]  }
 0x148   : > { %1034 = vmatpush1.bf16.msra.mxu0 %v3668_v45  ;;  %1315 = vmatpush1.bf16.msra.mxu1 %v3671_v46  ;;  %v3739_v45 = vld [vmem:[#allocation2 + $0x134] ss:$24 sps:$4 sm:$0xff]   ;;  %v1514_v46 = vsel %vm402_vm3, %v1505_v37, %v1513_v38  ;;  %v3776_v38 = vld [vmem:[#allocation2 + $0x3f0] ss:$24 sps:$4 sm:$0xff]  }
 0x149   : > { %1035 = vmatprep.subr.bf16.mxu0 %v3676_v47  ;;  %1316 = vmatprep.subr.bf16.mxu1 %v3679_v48  ;;  %v4242_v47 = vld.sshfl [vmem:[%s4148_s16 + $0xc] sm:$0x2 pattern:$0x76325410]  ;;  %v1508_v48 = vunpack.c.l.b16 %v4233_v39 }
 0x14c   : > { %1036 = vmatpush1.bf16.msra.mxu0 %v3674_v49  ;;  %1317 = vmatpush1.bf16.msra.mxu1 %v3677_v50  ;;  %v3734_v50 = vld [vmem:[#allocation2 + $0x128] ss:$24 sps:$4 sm:$0xff]  }
 0x14d   : > { %1037 = vmatprep.subr.bf16.mxu0 %v3682_v51  ;;  %1318 = vmatprep.subr.bf16.mxu1 %v3685_v52  ;;  %v3737_v51 = vld [vmem:[#allocation2 + $0x130] ss:$24 sps:$4 sm:$0xff]   ;;  %v3742_v52 = vld [vmem:[#allocation2 + $0x15c] ss:$24 sps:$4 sm:$0xff]  }
 0x150   : > { %1038 = vmatpush1.bf16.msra.mxu0 %v3680_v53  ;;  %1319 = vmatpush1.bf16.msra.mxu1 %v3683_v54  ;;  %v1516_v53 = vsel %vm405_vm4, %v1515_v43, %v1514_v46  ;;  %v3745_v54 = vld [vmem:[#allocation2 + $0x164] ss:$24 sps:$4 sm:$0xff]  }
 0x151   : > { %1039 = vmatprep.subr.bf16.mxu0 %v3688_v55  ;;  %1320 = vmatprep.subr.bf16.mxu1 %v3691_v56  ;;  %v4249_v55 = vld.sshfl [vmem:[%s4148_s16 + $0xe] sm:$0x2 pattern:$0x76325410]  ;;  %v1509_v56 = vunpack.c.l.b16 %v4242_v47  ;;  %v3784_v43 = vld [vmem:[#allocation2 + $0x424] ss:$24 sps:$4 sm:$0xff]  }
 0x152   : > { %v3787_v46 = vld [vmem:[#allocation2 + $0x42c] ss:$24 sps:$4 sm:$0xff]   ;;  %v3797_v47 = vld [vmem:[#allocation2 + $0x340] ss:$24 sps:$4 sm:$0xff]  }
 0x154   : > { %1040 = vmatpush1.bf16.msra.mxu0 %v3686_v57  ;;  %1321 = vmatpush1.bf16.msra.mxu1 %v3689_v58  ;;  %v1519_v57 = vrot.slane %v1508_v48, 5 }
 0x155   : > { %1041 = vmatprep.subr.bf16.mxu0 %v3694_v59  ;;  %1322 = vmatprep.subr.bf16.mxu1 %v3697_v60  ;;  %v3740_v59 = vld [vmem:[#allocation2 + $0x158] ss:$24 sps:$4 sm:$0xff]  }
 0x156   : > { %v3743_v60 = vld [vmem:[#allocation2 + $0x160] ss:$24 sps:$4 sm:$0xff]  }
 0x158   : > { %1042 = vmatpush1.bf16.msra.mxu0 %v3692_v61  ;;  %1323 = vmatpush1.bf16.msra.mxu1 %v3695_v62  ;;  %v1510_v61 = vunpack.c.l.b16 %v4249_v55  ;;  %v1521_v62 = vrot.slane %v1509_v56, 4  ;;  %v3802_v55 = vld [vmem:[#allocation2 + $0x374] ss:$24 sps:$4 sm:$0xff]  }
 0x159   : > { %1349 = vmatprep.subr.bf16.mxu0 %v3700_v1  ;;  %1390 = vmatprep.subr.bf16.mxu1 %v3703_v2 }
 0x15a   : > { %v1523_v1 = vrot.slane %v1510_v61, 3 }
 0x15b   : > { %1060 = vmatmul.mubr.bf16.vlgmr.msra.gmra.mrb[12].mxu0 %v4194_v33  ;;  %1341 = vmatmul.mubr.bf16.vlgmr.msra.gmra.mrb[4].mxu1 %v4202_v6  ;;  %v4227_v33 = vld.sshfl [vmem:[%s4148_s16 + $0x8] sm:$0x2 pattern:$0x76325410] }
 0x15c   : > { %1350 = vmatpush1.bf16.msra.mxu0 %v3698_v4  ;;  %1391 = vmatpush1.bf16.msra.mxu1 %v3701_v5  ;;  %v1507_v40 = vunpack.c.l.b16 %v4227_v33  ;;  %v2078_v33 = vrot.slane %v1509_v56, 5 }
 0x15d   : > { %1351 = vmatprep.subr.bf16.mxu0 %v3706_v7  ;;  %1392 = vmatprep.subr.bf16.mxu1 %v3709_v8  ;;  %v3746_v7 = vld [vmem:[#allocation2 + $0x300] ss:$24 sps:$4 sm:$0xff]   ;;  %v3748_v8 = vld [vmem:[#allocation2 + $0x304] ss:$24 sps:$4 sm:$0xff]  }
 0x15e   : > { %1381 = vmatprep.mubr.bf16.mxu0 %v4018_v21  ;;  %1422 = vmatprep.mubr.bf16.mxu1 %v4018_v21  ;;  %v1517_v49 = vrot.slane %v1507_v40, 6  ;;  %v2074_v13 = vrot.slane %v1507_v40, 7 }
 0x160   : > { %1352 = vmatpush1.bf16.msra.mxu0 %v3704_v9  ;;  %1393 = vmatpush1.bf16.msra.mxu1 %v3707_v10  ;;  %v1518_v58 = vsel %vm408_vm5, %v1517_v49, %v1516_v53  ;;  %v3749_v9 = vld [vmem:[#allocation2 + $0x308] ss:$24 sps:$4 sm:$0xff]   ;;  %v3751_v10 = vld [vmem:[#allocation2 + $0x30c] ss:$24 sps:$4 sm:$0xff]  }
 0x161   : > { %1353 = vmatprep.subr.bf16.mxu0 %v3712_v11  ;;  %1394 = vmatprep.subr.bf16.mxu1 %v3715_v12  ;;  %v1520_v63 = vsel %vm411_vm6, %v1519_v57, %v1518_v58  ;;  %v3754_v11 = vld [vmem:[#allocation2 + $0x334] ss:$24 sps:$4 sm:$0xff]   ;;  %v3752_v12 = vld [vmem:[#allocation2 + $0x330] ss:$24 sps:$4 sm:$0xff]  }
 0x162   : > { %v1522_v2 = vsel %vm414_vm7, %v1521_v62, %v1520_v63  ;;  %v3790_v49 = vld [vmem:[#allocation2 + $0x454] ss:$24 sps:$4 sm:$0xff]  }
 0x163   : > { %v1524_v4 = vsel %vm417_vm8, %v1523_v1, %v1522_v2  ;;  %v3796_v53 = vld [vmem:[#allocation2 + $0x314] ss:$24 sps:$4 sm:$0xff]  }
 0x164   : > { %1354 = vmatpush1.bf16.msra.mxu0 %v3710_v15  ;;  %1395 = vmatpush1.bf16.msra.mxu1 %v3713_v16  ;;  %v1525_v5 = vpack.c.b16 %v1524_v4, %v1524_v4  ;;  %v3755_v15 = vld [vmem:[#allocation2 + $0x338] ss:$24 sps:$4 sm:$0xff]   ;;  %v3760_v16 = vld [vmem:[#allocation2 + $0x364] ss:$24 sps:$4 sm:$0xff]  }
 0x165   : > { %1355 = vmatprep.subr.bf16.mxu0 %v3718_v17  ;;  %1396 = vmatprep.subr.bf16.mxu1 %v3721_v18  ;;  %v3763_v17 = vld [vmem:[#allocation2 + $0x36c] ss:$24 sps:$4 sm:$0xff]   ;;  %v3758_v18 = vld [vmem:[#allocation2 + $0x360] ss:$24 sps:$4 sm:$0xff]  }
 0x168   : > { %1356 = vmatpush1.bf16.msra.mxu0 %v3716_v22  ;;  %1397 = vmatpush1.bf16.msra.mxu1 %v3719_v23  ;;  %v3761_v22 = vld [vmem:[#allocation2 + $0x368] ss:$24 sps:$4 sm:$0xff]   ;;  %v3766_v23 = vld [vmem:[#allocation2 + $0x394] ss:$24 sps:$4 sm:$0xff]  }
 0x169   : > { %1357 = vmatprep.subr.bf16.mxu0 %v3724_v24  ;;  %1398 = vmatprep.subr.bf16.mxu1 %v3727_v25  ;;  %v3769_v24 = vld [vmem:[#allocation2 + $0x39c] ss:$24 sps:$4 sm:$0xff]   ;;  %v3764_v25 = vld [vmem:[#allocation2 + $0x390] ss:$24 sps:$4 sm:$0xff]  }
 0x16c   : > { %1358 = vmatpush1.bf16.msra.mxu0 %v3722_v31  ;;  %1399 = vmatpush1.bf16.msra.mxu1 %v3725_v32  ;;  %v3775_v31 = vld [vmem:[#allocation2 + $0x3cc] ss:$24 sps:$4 sm:$0xff]   ;;  %v3770_v32 = vld [vmem:[#allocation2 + $0x3c0] ss:$24 sps:$4 sm:$0xff]  }
 0x16d   : > { %1359 = vmatprep.subr.bf16.mxu0 %v3730_v35  ;;  %1400 = vmatprep.subr.bf16.mxu1 %v3733_v36  ;;  %v3773_v35 = vld [vmem:[#allocation2 + $0x3c8] ss:$24 sps:$4 sm:$0xff]   ;;  %v3778_v36 = vld [vmem:[#allocation2 + $0x3f4] ss:$24 sps:$4 sm:$0xff]  }
 0x170   : > { %1360 = vmatpush1.bf16.msra.mxu0 %v3728_v41  ;;  %1401 = vmatpush1.bf16.msra.mxu1 %v3731_v42  ;;  %v3781_v41 = vld [vmem:[#allocation2 + $0x3fc] ss:$24 sps:$4 sm:$0xff]   ;;  %v3779_v42 = vld [vmem:[#allocation2 + $0x3f8] ss:$24 sps:$4 sm:$0xff]  }
 0x171   : > { %1361 = vmatprep.subr.bf16.mxu0 %v3736_v44  ;;  %1402 = vmatprep.subr.bf16.mxu1 %v3739_v45  ;;  %v3782_v44 = vld [vmem:[#allocation2 + $0x420] ss:$24 sps:$4 sm:$0xff]  }
 0x172   : > { %v3785_v45 = vld [vmem:[#allocation2 + $0x428] ss:$24 sps:$4 sm:$0xff]  }
 0x174   : > { %1362 = vmatpush1.bf16.msra.mxu0 %v3734_v50  ;;  %1403 = vmatpush1.bf16.msra.mxu1 %v3737_v51  ;;  %v3788_v50 = vld [vmem:[#allocation2 + $0x450] ss:$24 sps:$4 sm:$0xff]   ;;  %v3793_v51 = vld [vmem:[#allocation2 + $0x45c] ss:$24 sps:$4 sm:$0xff]  }
 0x175   : > { %1363 = vmatprep.subr.bf16.mxu0 %v3742_v52  ;;  %1404 = vmatprep.subr.bf16.mxu1 %v3745_v54  ;;  %v3791_v52 = vld [vmem:[#allocation2 + $0x458] ss:$24 sps:$4 sm:$0xff]  }
 0x178   : > { %1364 = vmatpush1.bf16.msra.mxu0 %v3740_v59  ;;  %1405 = vmatpush1.bf16.msra.mxu1 %v3743_v60 }
 0x179   : > { %3554 = vmatprep.subr.bf16.mxu0 %v4016_v0  ;;  %1859 = vmatprep.subr.bf16.mxu1 %v3748_v8 }
 0x17b   : > { %1382 = vmatmul.mubr.bf16.vlgmr.msra.gmra.mrb[16].mxu0 %v4202_v6  ;;  %1423 = vmatmul.mubr.bf16.vlgmr.msra.gmra.mrb[8].mxu1 %v4202_v6  ;;  %v3757_v6 = vld [vmem:[#allocation2 + $0x33c] ss:$24 sps:$4 sm:$0xff]  }
 0x17c   : > { %3555 = vmatpush3.bf16.msra.mxu0 %v4154_v3  ;;  %3556 = vmatprep.mubr.msk.bf16.mxu0 %vm4017_vm0, %v4016_v0 }
 0x17d   : > { %1891 = vmatprep.mubr.bf16.mxu1 %v4018_v21  ;;  %1860 = vmatpush1.bf16.msra.mxu1 %v3746_v7 }
 0x17e   : > { %1900 = vmatprep.subr.bf16.mxu0 %v3751_v10  ;;  %1861 = vmatprep.subr.bf16.mxu1 %v3754_v11 }
 0x181   : > { %1862 = vmatpush1.bf16.msra.mxu1 %v3752_v12 }
 0x182   : > { %1863 = vmatprep.subr.bf16.mxu1 %v3760_v16  ;;  %v2069_v16 = vrot.slane %v1504_v20, 2 }
 0x183   : > { %3557 = vmatmul.mubr.msk.bf16.vlgmr.msra.gmra.mrb[20].mxu0 %vm420_vm9, %v1525_v5 }
 0x184   : > { %1932 = vmatprep.mubr.bf16.mxu0 %v4018_v21  ;;  %1901 = vmatpush1.bf16.msra.mxu0 %v3749_v9 }
 0x185   : > { %1902 = vmatprep.subr.bf16.mxu0 %v3757_v6  ;;  %1864 = vmatpush1.bf16.msra.mxu1 %v3758_v18 }
 0x186   : > { %1865 = vmatprep.subr.bf16.mxu1 %v3766_v23 }
 0x188   : > { %1903 = vmatpush1.bf16.msra.mxu0 %v3755_v15  ;;  %v2068_v15 = vrot.slane %v1503_v19, 3 }
 0x189   : > { %1904 = vmatprep.subr.bf16.mxu0 %v3763_v17  ;;  %1866 = vmatpush1.bf16.msra.mxu1 %v3764_v25  ;;  %v2071_v17 = vrot.slane %v1505_v37, 1 }
 0x18a   : > { %1867 = vmatprep.subr.bf16.mxu1 %v3772_v30  ;;  %v2070_v18 = vsel %vm399_vm2, %v2069_v16, %v2068_v15  ;;  %v3829_v15 = vld [vmem:[#allocation2 + $0x4bc] ss:$24 sps:$4 sm:$0xff]   ;;  %v3827_v16 = vld [vmem:[#allocation2 + $0x4b8] ss:$24 sps:$4 sm:$0xff]  }
 0x18c   : > { %1905 = vmatpush1.bf16.msra.mxu0 %v3761_v22  ;;  %v2072_v22 = vsel %vm402_vm3, %v2071_v17, %v2070_v18  ;;  %v3835_v17 = vld [vmem:[#allocation2 + $0x4ec] ss:$24 sps:$4 sm:$0xff]   ;;  %v3833_v18 = vld [vmem:[#allocation2 + $0x4e8] ss:$24 sps:$4 sm:$0xff]  }
 0x18d   : > { %1906 = vmatprep.subr.bf16.mxu0 %v3769_v24  ;;  %1868 = vmatpush1.bf16.msra.mxu1 %v3770_v32  ;;  %v2073_v37 = vsel %vm405_vm4, %v1506_v34, %v2072_v22  ;;  %v2080_v34 = vrot.slane %v1510_v61, 4  ;;  %v3841_v22 = vld [vmem:[#allocation2 + $0x51c] ss:$24 sps:$4 sm:$0xff]  }
 0x18e   : > { %1869 = vmatprep.subr.bf16.mxu1 %v3778_v36  ;;  %v2076_v36 = vrot.slane %v1508_v48, 6  ;;  %v3799_v48 = vld [vmem:[#allocation2 + $0x344] ss:$24 sps:$4 sm:$0xff]  }
 0x190   : > { %1907 = vmatpush1.bf16.msra.mxu0 %v3767_v29 }
 0x191   : > { %1908 = vmatprep.subr.bf16.mxu0 %v3775_v31  ;;  %1870 = vmatpush1.bf16.msra.mxu1 %v3776_v38  ;;  %v2075_v38 = vsel %vm408_vm5, %v2074_v13, %v2073_v37  ;;  %v3848_v13 = vld [vmem:[#allocation2 + $0x570] ss:$24 sps:$4 sm:$0xff]   ;;  %v3854_v37 = vld [vmem:[#allocation2 + $0x5a0] ss:$24 sps:$4 sm:$0xff]  }
 0x192   : > { %1871 = vmatprep.subr.bf16.mxu1 %v3784_v43 }
 0x194   : > { %1909 = vmatpush1.bf16.msra.mxu0 %v3773_v35 }
 0x195   : > { %1910 = vmatprep.subr.bf16.mxu0 %v3781_v41  ;;  %1872 = vmatpush1.bf16.msra.mxu1 %v3782_v44  ;;  %v2077_v41 = vsel %vm411_vm6, %v2076_v36, %v2075_v38  ;;  %v3859_v36 = vld [vmem:[#allocation2 + $0x5ac] ss:$24 sps:$4 sm:$0xff]  }
 0x196   : > { %1873 = vmatprep.subr.bf16.mxu1 %v3790_v49  ;;  %v3820_v49 = vld [vmem:[#allocation2 + $0x484] ss:$24 sps:$4 sm:$0xff]   ;;  %v3862_v38 = vld [vmem:[#allocation2 + $0x5d4] ss:$24 sps:$4 sm:$0xff]  }
 0x198   : > { %1911 = vmatpush1.bf16.msra.mxu0 %v3779_v42 }
 0x199   : > { %1912 = vmatprep.subr.bf16.mxu0 %v3787_v46  ;;  %1874 = vmatpush1.bf16.msra.mxu1 %v3788_v50  ;;  %v2079_v46 = vsel %vm414_vm7, %v2078_v33, %v2077_v41  ;;  %v3800_v50 = vld [vmem:[#allocation2 + $0x370] ss:$24 sps:$4 sm:$0xff]  }
 0x19a   : > { %1941 = vmatprep.subr.bf16.mxu1 %v3796_v53  ;;  %v2081_v56 = vsel %vm417_vm8, %v2080_v34, %v2079_v46  ;;  %v3826_v53 = vld [vmem:[#allocation2 + $0x4b4] ss:$24 sps:$4 sm:$0xff]   ;;  %v3860_v33 = vld [vmem:[#allocation2 + $0x5d0] ss:$24 sps:$4 sm:$0xff]  }
 0x19b   : > { %v2082_v61 = vpack.c.b16 %v2081_v56, %v2081_v56  ;;  %v3863_v41 = vld [vmem:[#allocation2 + $0x5d8] ss:$24 sps:$4 sm:$0xff]  }
 0x19c   : > { %1913 = vmatpush1.bf16.msra.mxu0 %v3785_v45 }
 0x19d   : > { %1914 = vmatprep.subr.bf16.mxu0 %v3793_v51  ;;  %v3818_v51 = vld [vmem:[#allocation2 + $0x480] ss:$24 sps:$4 sm:$0xff]  }
 0x1a0   : > { %1915 = vmatpush1.bf16.msra.mxu0 %v3791_v52  ;;  %v3805_v52 = vld [vmem:[#allocation2 + $0x3a4] ss:$24 sps:$4 sm:$0xff]  }
 0x1a1   : > { %3560 = vmatprep.subr.bf16.mxu0 %v4016_v0 }
 0x20e   : > { %v979_v54 = vpop.f32.mrb[8].mxu0  ;;  %v1020_v57 = vpop.f32.mrb[0].mxu1 }
 0x20f   : > { %v981_v58 = vpop.f32.mrb[9].mxu0  ;;  %v1022_v59 = vpop.f32.mrb[1].mxu1 }
 0x210   : > { %v983_v60 = vpop.f32.mrb[10].mxu0  ;;  %v1024_v62 = vpop.f32.mrb[2].mxu1 }
 0x211   : > { %v984_v63 = vpop.f32.mrb[11].mxu0  ;;  %v1025_v1 = vpop.f32.mrb[3].mxu1  ;;  %v3811_v60 = vld [vmem:[#allocation2 + $0x404] ss:$24 sps:$4 sm:$0xff]   ;;  %v3838_v62 = vld [vmem:[#allocation2 + $0x514] ss:$24 sps:$4 sm:$0xff]  }
 0x212   : > { %v3809_v63 = vld [vmem:[#allocation2 + $0x400] ss:$24 sps:$4 sm:$0xff]   ;;  %v3836_v1 = vld [vmem:[#allocation2 + $0x510] ss:$24 sps:$4 sm:$0xff]  }
 0x22e   : > { %v1061_v2 = vpop.f32.mrb[12].mxu0  ;;  %v1342_v4 = vpop.f32.mrb[4].mxu1 }
 0x22f   : > { %v4273_v5 = vadd.f32 %v1342_v4, %v979_v54  ;;  %v1063_v7 = vpop.f32.mrb[13].mxu0  ;;  %v1344_v8 = vpop.f32.mrb[5].mxu1  ;;  %v3824_v54 = vld [vmem:[#allocation2 + $0x4b0] ss:$24 sps:$4 sm:$0xff]   ;;  %v3844_v4 = vld [vmem:[#allocation2 + $0x544] ss:$24 sps:$4 sm:$0xff]  }
 0x230   : > { %v4275_v9 = vadd.f32 %v1344_v8, %v981_v58  ;;  %v1065_v10 = vpop.f32.mrb[14].mxu0  ;;  %v1346_v11 = vpop.f32.mrb[6].mxu1  ;;  %v3806_v58 = vld [vmem:[#allocation2 + $0x3d0] ss:$24 sps:$4 sm:$0xff]   ;;  %v3842_v8 = vld [vmem:[#allocation2 + $0x540] ss:$24 sps:$4 sm:$0xff]  }
 0x231   : > { %v1066_v6 = vpop.f32.mrb[15].mxu0  ;;  %v1347_v12 = vpop.f32.mrb[7].mxu1  ;;  %v3817_v10 = vld [vmem:[#allocation2 + $0x464] ss:$24 sps:$4 sm:$0xff]   ;;  %v3815_v11 = vld [vmem:[#allocation2 + $0x460] ss:$24 sps:$4 sm:$0xff]  }
 0x232   : > { %v3823_v6 = vld [vmem:[#allocation2 + $0x48c] ss:$24 sps:$4 sm:$0xff]   ;;  %v3821_v12 = vld [vmem:[#allocation2 + $0x488] ss:$24 sps:$4 sm:$0xff]  }
 0x24e   : > { %v1383_v23 = vpop.f32.mrb[16].mxu0  ;;  %v1424_v24 = vpop.f32.mrb[8].mxu1 }
 0x24f   : > { %v4285_v25 = vadd.f32 %v1383_v23, %v1020_v57  ;;  %v4287_v29 = vadd.f32 %v1424_v24, %v1061_v2  ;;  %v1385_v30 = vpop.f32.mrb[17].mxu0  ;;  %v1426_v31 = vpop.f32.mrb[9].mxu1  ;;  %v3808_v57 = vld [vmem:[#allocation2 + $0x3d4] ss:$24 sps:$4 sm:$0xff]   ;;  %v3839_v23 = vld [vmem:[#allocation2 + $0x518] ss:$24 sps:$4 sm:$0xff]  }
 0x250   : > { %v4291_v14 = vadd.f32 %v1385_v30, %v1022_v59  ;;  %v4293_v19 = vadd.f32 %v1426_v31, %v1063_v7  ;;  %v1387_v20 = vpop.f32.mrb[18].mxu0  ;;  %v1428_v28 = vpop.f32.mrb[10].mxu1  ;;  %v3830_v59 = vld [vmem:[#allocation2 + $0x4e0] ss:$24 sps:$4 sm:$0xff]   ;;  %v3814_v2 = vld [vmem:[#allocation2 + $0x434] ss:$24 sps:$4 sm:$0xff]  }
 0x251   : > { %v1388_v32 = vpop.f32.mrb[19].mxu0  ;;  %v1429_v35 = vpop.f32.mrb[11].mxu1  ;;  %v3812_v7 = vld [vmem:[#allocation2 + $0x430] ss:$24 sps:$4 sm:$0xff]   ;;  %v3847_v24 = vld [vmem:[#allocation2 + $0x54c] ss:$24 sps:$4 sm:$0xff]  }
 0x252   : > { %v3845_v30 = vld [vmem:[#allocation2 + $0x548] ss:$24 sps:$4 sm:$0xff]   ;;  %v3850_v31 = vld [vmem:[#allocation2 + $0x574] ss:$24 sps:$4 sm:$0xff]   ;;  %v3851_v28 = vld [vmem:[#allocation2 + $0x578] ss:$24 sps:$4 sm:$0xff]  }
 0x253   : > { %v3853_v20 = vld [vmem:[#allocation2 + $0x57c] ss:$24 sps:$4 sm:$0xff]   ;;  %v3857_v35 = vld [vmem:[#allocation2 + $0x5a8] ss:$24 sps:$4 sm:$0xff]  }
 0x254   : > { %v3856_v32 = vld [vmem:[#allocation2 + $0x5a4] ss:$24 sps:$4 sm:$0xff]  }
 0x256   : > { %v1563_v40 = vpop.f32.mrb[20].mxu0 }
 0x257   : > { %v1564_v42 = vadd.f32 %v4191_v26, %v1563_v40  ;;  %v3558_v43 = vpop.f32.mrb[21].mxu0  ;;  %v3865_v40 = vld [vmem:[#allocation2 + $0x5dc] ss:$24 sps:$4 sm:$0xff]  }
 0x258   : > { %v1566_v44 = vpop.f32.mrb[22].mxu0  ;;  %v3890_v43 = vld [vmem:[#allocation4 + $0x40] sm:$0xff]  }
 0x259   : > { %v4307_v45 = vpack.c.bf16 %v1564_v42, %v1564_v42  ;;  %v3559_v39 = vpop.f32.mrb[23].mxu0  ;;  %v3868_v42 = vld [vmem:[#allocation2 + $0x494] ss:$24 sps:$4 sm:$0xff]  }
 0x25b   : > { %1892 = vmatmul.mubr.bf16.vlgmr.msra.gmra.mrb[12].mxu1 %v4307_v45  ;;  %1933 = vmatmul.mubr.bf16.vlgmr.msra.gmra.mrb[24].mxu0 %v4307_v45 }
 0x25c   : > { %1942 = vmatpush1.bf16.msra.mxu1 %v3794_v27  ;;  %3561 = vmatpush3.bf16.msra.mxu0 %v4154_v3  ;;  %v3803_v3 = vld [vmem:[#allocation2 + $0x3a0] ss:$24 sps:$4 sm:$0xff]  }
 0x25d   : > { %1943 = vmatprep.subr.bf16.mxu1 %v3799_v48  ;;  %3562 = vmatprep.mubr.msk.bf16.mxu0 %vm4017_vm0, %v4016_v0  ;;  %v3832_v0 = vld [vmem:[#allocation2 + $0x4e4] ss:$24 sps:$4 sm:$0xff]  }
 0x25e   : > { %1973 = vmatprep.mubr.bf16.mxu1 %v4018_v21  ;;  %2416 = vmatprep.subr.bf16.mxu0 %v3820_v49 }
 0x260   : > { %1944 = vmatpush1.bf16.msra.mxu1 %v3797_v47 }
 0x261   : > { %1945 = vmatprep.subr.bf16.mxu1 %v3802_v55 }
 0x263   : > { %3563 = vmatmul.mubr.msk.bf16.vlgmr.msra.gmra.mrb[28].mxu0 %vm420_vm9, %v2082_v61 }
 0x264   : > { %1946 = vmatpush1.bf16.msra.mxu1 %v3800_v50  ;;  %2417 = vmatpush1.bf16.msra.mxu0 %v3818_v51 }
 0x265   : > { %1947 = vmatprep.subr.bf16.mxu1 %v3805_v52  ;;  %2418 = vmatprep.subr.bf16.mxu0 %v3826_v53  ;;  %v3866_v53 = vld [vmem:[#allocation2 + $0x490] ss:$24 sps:$4 sm:$0xff]  }
 0x266   : > { %2448 = vmatprep.mubr.bf16.mxu0 %v4018_v21 }
 0x268   : > { %1948 = vmatpush1.bf16.msra.mxu1 %v3803_v3  ;;  %2419 = vmatpush1.bf16.msra.mxu0 %v3824_v54  ;;  %v3871_v54 = vld [vmem:[#allocation2 + $0x4c4] ss:$24 sps:$4 sm:$0xff]  }
 0x269   : > { %1949 = vmatprep.subr.bf16.mxu1 %v3808_v57  ;;  %2420 = vmatprep.subr.bf16.mxu0 %v3832_v0  ;;  %v3891_v57 = vld [vmem:[#allocation4] sm:$0xff]   ;;  %v3874_v0 = vld [vmem:[#allocation2 + $0x4f4] ss:$24 sps:$4 sm:$0xff]  }
 0x26c   : > { %1950 = vmatpush1.bf16.msra.mxu1 %v3806_v58  ;;  %2421 = vmatpush1.bf16.msra.mxu0 %v3830_v59  ;;  %v3898_v58 = vld [vmem:[#allocation4 + $0x50] sm:$0xff]  }
 0x26d   : > { %1951 = vmatprep.subr.bf16.mxu1 %v3811_v60  ;;  %2422 = vmatprep.subr.bf16.mxu0 %v3838_v62  ;;  %v3872_v59 = vld [vmem:[#allocation2 + $0x4f0] ss:$24 sps:$4 sm:$0xff]   ;;  %v3877_v60 = vld [vmem:[#allocation2 + $0x524] ss:$24 sps:$4 sm:$0xff]  }
 0x26e   : > { %v3899_v62 = vld [vmem:[#allocation4 + $0x10] sm:$0xff]  }
 0x270   : > { %1952 = vmatpush1.bf16.msra.mxu1 %v3809_v63  ;;  %2423 = vmatpush1.bf16.msra.mxu0 %v3836_v1  ;;  %v3902_v63 = vld [vmem:[#allocation4 + $0x58] sm:$0xff]  }
 0x271   : > { %1953 = vmatprep.subr.bf16.mxu1 %v3814_v2  ;;  %2424 = vmatprep.subr.bf16.mxu0 %v3844_v4  ;;  %v3875_v1 = vld [vmem:[#allocation2 + $0x520] ss:$24 sps:$4 sm:$0xff]   ;;  %v3880_v2 = vld [vmem:[#allocation2 + $0x554] ss:$24 sps:$4 sm:$0xff]  }
 0x272   : > { %v3906_v4 = vld [vmem:[#allocation4 + $0x60] sm:$0xff]  }
 0x274   : > { %1954 = vmatpush1.bf16.msra.mxu1 %v3812_v7  ;;  %2425 = vmatpush1.bf16.msra.mxu0 %v3842_v8  ;;  %v3878_v7 = vld [vmem:[#allocation2 + $0x550] ss:$24 sps:$4 sm:$0xff]   ;;  %v3883_v8 = vld [vmem:[#allocation2 + $0x584] ss:$24 sps:$4 sm:$0xff]  }
 0x275   : > { %1955 = vmatprep.subr.bf16.mxu1 %v3817_v10  ;;  %2426 = vmatprep.subr.bf16.mxu0 %v3850_v31  ;;  %v3907_v10 = vld [vmem:[#allocation4 + $0x20] sm:$0xff]  }
 0x276   : > { %v3889_v31 = vld [vmem:[#allocation2 + $0x5e4] ss:$24 sps:$4 sm:$0xff]  }
 0x278   : > { %1956 = vmatpush1.bf16.msra.mxu1 %v3815_v11  ;;  %2427 = vmatpush1.bf16.msra.mxu0 %v3848_v13  ;;  %v3910_v11 = vld [vmem:[#allocation4 + $0x68] sm:$0xff]   ;;  %v3887_v13 = vld [vmem:[#allocation2 + $0x5e0] ss:$24 sps:$4 sm:$0xff]  }
 0x279   : > { %2457 = vmatprep.subr.bf16.mxu1 %v3823_v6  ;;  %2428 = vmatprep.subr.bf16.mxu0 %v3856_v32  ;;  %v3881_v6 = vld [vmem:[#allocation2 + $0x580] ss:$24 sps:$4 sm:$0xff]   ;;  %v3901_v32 = vld [vmem:[#allocation4 + $0x90] sm:$0xff]  }
 0x27b   : > { %1974 = vmatmul.mubr.bf16.vlgmr.msra.gmra.mrb[16].mxu1 %v4307_v45 }
 0x27c   : > { %2458 = vmatpush1.bf16.msra.mxu1 %v3821_v12  ;;  %2489 = vmatprep.mubr.bf16.mxu1 %v4018_v21  ;;  %v3886_v12 = vld [vmem:[#allocation2 + $0x5b4] ss:$24 sps:$4 sm:$0xff]  }
 0x27d   : > { %2459 = vmatprep.subr.bf16.mxu1 %v3829_v15  ;;  %2429 = vmatpush1.bf16.msra.mxu0 %v3854_v37  ;;  %v3911_v15 = vld [vmem:[#allocation4 + $0x28] sm:$0xff]   ;;  %v3900_v37 = vld [vmem:[#allocation4 + $0xd0] sm:$0xff]  }
 0x27e   : > { %2430 = vmatprep.subr.bf16.mxu0 %v3862_v38  ;;  %v3908_v38 = vld [vmem:[#allocation4 + $0xe0] sm:$0xff]  }
 0x280   : > { %2460 = vmatpush1.bf16.msra.mxu1 %v3827_v16 }
 0x281   : > { %2461 = vmatprep.subr.bf16.mxu1 %v3835_v17  ;;  %2431 = vmatpush1.bf16.msra.mxu0 %v3860_v33  ;;  %v3909_v33 = vld [vmem:[#allocation4 + $0xa0] sm:$0xff]  }
 0x282   : > { %2498 = vmatprep.subr.bf16.mxu0 %v3868_v42  ;;  %v3914_v42 = vld [vmem:[#allocation4 + $0x70] sm:$0xff]  }
 0x284   : > { %2462 = vmatpush1.bf16.msra.mxu1 %v3833_v18 }
 0x285   : > { %2463 = vmatprep.subr.bf16.mxu1 %v3841_v22 }
 0x288   : > { %2464 = vmatpush1.bf16.msra.mxu1 %v3839_v23 }
 0x289   : > { %2465 = vmatprep.subr.bf16.mxu1 %v3847_v24  ;;  %v3884_v24 = vld [vmem:[#allocation2 + $0x5b0] ss:$24 sps:$4 sm:$0xff]  }
 0x28c   : > { %2466 = vmatpush1.bf16.msra.mxu1 %v3845_v30 }
 0x28d   : > { %2467 = vmatprep.subr.bf16.mxu1 %v3853_v20  ;;  %v3892_v20 = vld [vmem:[#allocation4 + $0xc0] sm:$0xff]  }
 0x290   : > { %2468 = vmatpush1.bf16.msra.mxu1 %v3851_v28  ;;  %v3893_v28 = vld [vmem:[#allocation4 + $0x80] sm:$0xff]  }
 0x291   : > { %2469 = vmatprep.subr.bf16.mxu1 %v3859_v36  ;;  %v3905_v36 = vld [vmem:[#allocation4 + $0x98] sm:$0xff]  }
 0x294   : > { %2470 = vmatpush1.bf16.msra.mxu1 %v3857_v35  ;;  %v3904_v35 = vld [vmem:[#allocation4 + $0xd8] sm:$0xff]  }
 0x295   : > { %2471 = vmatprep.subr.bf16.mxu1 %v3865_v40  ;;  %v3912_v40 = vld [vmem:[#allocation4 + $0xe8] sm:$0xff]  }
 0x298   : > { %2472 = vmatpush1.bf16.msra.mxu1 %v3863_v41  ;;  %v3913_v41 = vld [vmem:[#allocation4 + $0xa8] sm:$0xff]  }
 0x299   : > { %3476 = vmatprep.subr.bf16.mxu1 %v3890_v43  ;;  %v3915_v43 = vld [vmem:[#allocation4 + $0x30] sm:$0xff]  }
 0x32e   : > { %v1893_v44 = vpop.f32.mrb[12].mxu1  ;;  %v1934_v27 = vpop.f32.mrb[24].mxu0 }
 0x32f   : > { %v4322_v34 = vadd.f32 %v1893_v44, %v4273_v5  ;;  %v4325_v45 = vadd.f32 %v1934_v27, %v4285_v25  ;;  %v1895_v39 = vpop.f32.mrb[13].mxu1  ;;  %v1936_v48 = vpop.f32.mrb[25].mxu0  ;;  %v3916_v44 = vld [vmem:[#allocation4 + $0xf0] sm:$0xff]  }
 0x330   : > { %v4328_v46 = vadd.f32 %v1895_v39, %v4275_v9  ;;  %v4331_v49 = vadd.f32 %v1936_v48, %v4291_v14  ;;  %v1897_v47 = vpop.f32.mrb[14].mxu1  ;;  %v1938_v56 = vpop.f32.mrb[26].mxu0  ;;  %v3894_v9 = vld [vmem:[#allocation4 + $0x48] sm:$0xff]   ;;  %v3869_v14 = vld [vmem:[#allocation2 + $0x4c0] ss:$24 sps:$4 sm:$0xff]   ;;  %v3917_v27 = vld [vmem:[#allocation4 + $0xb0] sm:$0xff]  }
 0x331   : > { %v1898_v55 = vpop.f32.mrb[15].mxu1  ;;  %v1939_v61 = vpop.f32.mrb[27].mxu0  ;;  %v3918_v39 = vld [vmem:[#allocation4 + $0x78] sm:$0xff]  }
 0x332   : > { %v3919_v48 = vld [vmem:[#allocation4 + $0x38] sm:$0xff]   ;;  %v3922_v55 = vld [vmem:[#allocation4 + $0x140] sm:$0xff]   ;;  %v2547_v61 = vlaneseq }
 0x333   : > { %v3920_v47 = vld [vmem:[#allocation4 + $0xf8] sm:$0xff]  }
 0x334   : > { %v3921_v56 = vld [vmem:[#allocation4 + $0xb8] sm:$0xff]  }
 0x336   : > { %v2120_v50 = vpop.f32.mrb[28].mxu0 }
 0x337   : > { %v2121_v51 = vadd.f32 %v4191_v26, %v2120_v50  ;;  %v3564_v5 = vpop.f32.mrb[29].mxu0  ;;  %v3895_v26 = vld [vmem:[#allocation4 + $0x8] sm:$0xff]   ;;  %v4346_v50 = vshrl.u32 %v2547_v61, 7 }
 0x338   : > { %v2123_v52 = vpop.f32.mrb[30].mxu0 }
 0x339   : > { %v4334_v25 = vpack.c.bf16 %v2121_v51, %v2121_v51  ;;  %v3565_v3 = vpop.f32.mrb[31].mxu0  ;;  %v2549_v51 = vsub.s32 0, %v4346_v50  ;;  %v2557_v5 = vsub.s32 2, %v4346_v50  ;;  %v2545_v52 = vld [vmem:[%s4378_s4] sm:$0x3f] }
 0x33b   : > { %2449 = vmatmul.mubr.bf16.vlgmr.msra.gmra.mrb[32].mxu0 %v4334_v25  ;;  %2490 = vmatmul.mubr.bf16.vlgmr.msra.gmra.mrb[20].mxu1 %v4334_v25  ;;  %v2550_v3 = vrot.slane %v2545_v52, %v2549_v51 }
 0x33c   : > { %2499 = vmatpush1.bf16.msra.mxu0 %v3866_v53  ;;  %2530 = vmatprep.mubr.bf16.mxu0 %v4018_v21  ;;  %v3903_v21 = vld [vmem:[#allocation4 + $0x18] sm:$0xff]   ;;  %v2553_v53 = vsub.s32 1, %v4346_v50 }
 0x33d   : > { %2500 = vmatprep.subr.bf16.mxu0 %v3871_v54  ;;  %3477 = vmatpush3.bf16.msra.mxu1 %v3891_v57  ;;  %v2558_v54 = vrot.slane %v2545_v52, %v2557_v5 }
 0x33e   : > { %3478 = vmatprep.subr.bf16.mxu1 %v3894_v9 }
 0x340   : > { %2501 = vmatpush1.bf16.msra.mxu0 %v3869_v14  ;;  %v2554_v14 = vrot.slane %v2545_v52, %v2553_v53 }
 0x341   : > { %2502 = vmatprep.subr.bf16.mxu0 %v3874_v0  ;;  %3479 = vmatpush3.bf16.msra.mxu1 %v3895_v26 }
 0x342   : > { %3480 = vmatprep.subr.bf16.mxu1 %v3898_v58 }
 0x344   : > { %2503 = vmatpush1.bf16.msra.mxu0 %v3872_v59 }
 0x345   : > { %2504 = vmatprep.subr.bf16.mxu0 %v3877_v60  ;;  %3481 = vmatpush3.bf16.msra.mxu1 %v3899_v62 }
 0x346   : > { %3482 = vmatprep.subr.bf16.mxu1 %v3902_v63 }
 0x348   : > { %2505 = vmatpush1.bf16.msra.mxu0 %v3875_v1 }
 0x349   : > { %2506 = vmatprep.subr.bf16.mxu0 %v3880_v2  ;;  %3483 = vmatpush3.bf16.msra.mxu1 %v3903_v21 }
 0x34a   : > { %3484 = vmatprep.subr.bf16.mxu1 %v3906_v4 }
 0x34c   : > { %2507 = vmatpush1.bf16.msra.mxu0 %v3878_v7 }
 0x34d   : > { %2508 = vmatprep.subr.bf16.mxu0 %v3883_v8  ;;  %3485 = vmatpush3.bf16.msra.mxu1 %v3907_v10 }
 0x34e   : > { %v1975_v16 = vpop.f32.mrb[16].mxu1  ;;  %3486 = vmatprep.subr.bf16.mxu1 %v3910_v11 }
 0x34f   : > { %v4340_v17 = vadd.f32 %v1975_v16, %v4287_v29  ;;  %v1977_v18 = vpop.f32.mrb[17].mxu1  ;;  %v3896_v29 = vld [vmem:[#allocation4 + $0xc8] sm:$0xff]  }
 0x350   : > { %v4343_v22 = vadd.f32 %v1977_v18, %v4293_v19  ;;  %v1979_v23 = vpop.f32.mrb[18].mxu1  ;;  %2509 = vmatpush1.bf16.msra.mxu0 %v3881_v6  ;;  %v3897_v19 = vld [vmem:[#allocation4 + $0x88] sm:$0xff]   ;;  %v3927_v18 = vld [vmem:[#allocation4 + $0x110] sm:$0xff]  }
 0x351   : > { %v1980_v30 = vpop.f32.mrb[19].mxu1  ;;  %2510 = vmatprep.subr.bf16.mxu0 %v3886_v12  ;;  %3487 = vmatpush3.bf16.msra.mxu1 %v3911_v15  ;;  %v3923_v15 = vld [vmem:[#allocation4 + $0x100] sm:$0xff]   ;;  %v3928_v23 = vld [vmem:[#allocation4 + $0x158] sm:$0xff]  }
 0x352   : > { %3488 = vmatprep.subr.bf16.mxu1 %v3914_v42  ;;  %v3930_v30 = vld [vmem:[#allocation4 + $0x160] sm:$0xff]  }
 0x354   : > { %2511 = vmatpush1.bf16.msra.mxu0 %v3884_v24  ;;  %v3929_v24 = vld [vmem:[#allocation4 + $0x118] sm:$0xff]  }
 0x355   : > { %2512 = vmatprep.subr.bf16.mxu0 %v3889_v31  ;;  %3489 = vmatpush3.bf16.msra.mxu1 %v3915_v43  ;;  %v3931_v31 = vld [vmem:[#allocation4 + $0x120] sm:$0xff]   ;;  %v3937_v43 = vld [vmem:[#allocation4 + $0x138] sm:$0xff]  }
 0x356   : > { %3490 = vmatprep.subr.bf16.mxu1 %v3918_v39 }
 0x358   : > { %2513 = vmatpush1.bf16.msra.mxu0 %v3887_v13  ;;  %v3932_v13 = vld [vmem:[#allocation4 + $0x168] sm:$0xff]  }
 0x359   : > { %3498 = vmatprep.subr.bf16.mxu0 %v3892_v20  ;;  %3491 = vmatpush3.bf16.msra.mxu1 %v3919_v48  ;;  %v3933_v20 = vld [vmem:[#allocation4 + $0x128] sm:$0xff]  }
 0x35a   : > { %3520 = vmatprep.subr.bf16.mxu1 %v3922_v55 }
 0x35b   : > { %2531 = vmatmul.mubr.bf16.vlgmr.msra.gmra.mrb[36].mxu0 %v4334_v25  ;;  %v2561_v25 = vsub.s32 3, %v4346_v50 }
 0x35c   : > { %3499 = vmatpush3.bf16.msra.mxu0 %v3893_v28  ;;  %v2565_v28 = vsub.s32 4, %v4346_v50 }
 0x35d   : > { %3500 = vmatprep.subr.bf16.mxu0 %v3896_v29  ;;  %v2562_v0 = vrot.slane %v2545_v52, %v2561_v25  ;;  %v3934_v29 = vld [vmem:[#allocation4 + $0x170] sm:$0xff]  }
 0x360   : > { %3501 = vmatpush3.bf16.msra.mxu0 %v3897_v19  ;;  %v2569_v19 = vsub.s32 5, %v4346_v50 }
 0x361   : > { %3502 = vmatprep.subr.bf16.mxu0 %v3900_v37  ;;  %v3935_v37 = vld [vmem:[#allocation4 + $0x130] sm:$0xff]  }
 0x364   : > { %3503 = vmatpush3.bf16.msra.mxu0 %v3901_v32  ;;  %v2566_v32 = vrot.slane %v2545_v52, %v2565_v28 }
 0x365   : > { %3504 = vmatprep.subr.bf16.mxu0 %v3904_v35  ;;  %v3936_v35 = vld [vmem:[#allocation4 + $0x178] sm:$0xff]  }
 0x368   : > { %3505 = vmatpush3.bf16.msra.mxu0 %v3905_v36 }
 0x369   : > { %3506 = vmatprep.subr.bf16.mxu0 %v3908_v38  ;;  %v2570_v38 = vrot.slane %v2545_v52, %v2569_v19 }
 0x36c   : > { %3507 = vmatpush3.bf16.msra.mxu0 %v3909_v33 }
 0x36d   : > { %3508 = vmatprep.subr.bf16.mxu0 %v3912_v40 }
 0x370   : > { %3509 = vmatpush3.bf16.msra.mxu0 %v3913_v41 }
 0x371   : > { %3510 = vmatprep.subr.bf16.mxu0 %v3916_v44 }
 0x374   : > { %3511 = vmatpush3.bf16.msra.mxu0 %v3917_v27 }
 0x375   : > { %3512 = vmatprep.subr.bf16.mxu0 %v3920_v47 }
 0x378   : > { %3513 = vmatpush3.bf16.msra.mxu0 %v3921_v56 }
 0x40e   : > { %v2450_v57 = vpop.f32.mrb[32].mxu0  ;;  %v2491_v9 = vpop.f32.mrb[20].mxu1 }
 0x40f   : > { %v2539_v26 = vadd.f32 %v2450_v57, %v4322_v34  ;;  %v2541_v58 = vadd.f32 %v2491_v9, %v4325_v45  ;;  %v2452_v59 = vpop.f32.mrb[33].mxu0  ;;  %v2493_v60 = vpop.f32.mrb[21].mxu1  ;;  %v3924_v45 = vld [vmem:[#allocation4 + $0x148] sm:$0xff]  }
 0x410   : > { %v2540_v62 = vadd.f32 %v2452_v59, %v4328_v46  ;;  %v2542_v63 = vadd.f32 %v2493_v60, %v4331_v49  ;;  %v2454_v1 = vpop.f32.mrb[34].mxu0  ;;  %v2495_v2 = vpop.f32.mrb[22].mxu1  ;;  %v3925_v46 = vld [vmem:[#allocation4 + $0x108] sm:$0xff]   ;;  %v3926_v49 = vld [vmem:[#allocation4 + $0x150] sm:$0xff]  }
 0x411   : > { %v2577_v21 = vadd.f32 %v2550_v3, %v2539_v26  ;;  %v2579_v4 = vadd.f32 %v2558_v54, %v2541_v58  ;;  %v2455_v7 = vpop.f32.mrb[35].mxu0  ;;  %v2496_v8 = vpop.f32.mrb[23].mxu1 }
 0x412   : > { %v2578_v10 = vadd.f32 %v2554_v14, %v2540_v62  ;;  %v2580_v11 = vadd.f32 %v2562_v0, %v2542_v63 }
 0x413   : > { %v2583_v34 = vpack.c.bf16 %v2577_v21, %v2577_v21  ;;  %v2585_v16 = vpack.c.bf16 %v2579_v4, %v2579_v4 }
 0x414   : > { %v2584_v6 = vpack.c.bf16 %v2578_v10, %v2578_v10  ;;  %v2586_v12 = vpack.c.bf16 %v2580_v11, %v2580_v11 }
 0x416   : > { %3012 = vmatprep.mubr.bf16.mxu1 %v2584_v6  ;;  %3052 = vmatprep.mubr.bf16.mxu0 %v2586_v12 }
 0x417   : > { %3013 = vmatmul.mubr.bf16.vlgmr.msra.gmra.mrb[24].mxu1 %v2583_v34  ;;  %3053 = vmatmul.mubr.bf16.vlgmr.msra.gmra.mrb[40].mxu0 %v2585_v16 }
 0x418   : > { %3521 = vmatpush3.bf16.msra.mxu1 %v3923_v15 }
 0x419   : > { %3522 = vmatprep.subr.bf16.mxu1 %v3924_v45 }
 0x41c   : > { %3523 = vmatpush3.bf16.msra.mxu1 %v3925_v46 }
 0x41d   : > { %3524 = vmatprep.subr.bf16.mxu1 %v3926_v49 }
 0x420   : > { %3525 = vmatpush3.bf16.msra.mxu1 %v3927_v18 }
 0x421   : > { %3526 = vmatprep.subr.bf16.mxu1 %v3928_v23 }
 0x424   : > { %3527 = vmatpush3.bf16.msra.mxu1 %v3929_v24 }
 0x425   : > { %3528 = vmatprep.subr.bf16.mxu1 %v3930_v30 }
 0x428   : > { %3529 = vmatpush3.bf16.msra.mxu1 %v3931_v31 }
 0x429   : > { %3530 = vmatprep.subr.bf16.mxu1 %v3932_v13 }
 0x42c   : > { %3531 = vmatpush3.bf16.msra.mxu1 %v3933_v20 }
 0x42d   : > { %3532 = vmatprep.subr.bf16.mxu1 %v3934_v29 }
 0x42e   : > { %v2532_v36 = vpop.f32.mrb[36].mxu0 }
 0x42f   : > { %v2543_v33 = vadd.f32 %v2532_v36, %v4340_v17  ;;  %v2534_v40 = vpop.f32.mrb[37].mxu0  ;;  %v3417_v17 = vld [vmem:[%s4380_s6] ss:$0 sm:$0xff] }
 0x430   : > { %v2544_v41 = vadd.f32 %v2534_v40, %v4343_v22  ;;  %v2536_v42 = vpop.f32.mrb[38].mxu0  ;;  %3533 = vmatpush3.bf16.msra.mxu1 %v3935_v37 }
 0x431   : > { %v2581_v44 = vadd.f32 %v2566_v32, %v2543_v33  ;;  %v2537_v27 = vpop.f32.mrb[39].mxu0  ;;  %3534 = vmatprep.subr.bf16.mxu1 %v3936_v35 }
 0x432   : > { %v2582_v39 = vadd.f32 %v2570_v38, %v2544_v41 }
 0x433   : > { %v2587_v47 = vpack.c.bf16 %v2581_v44, %v2581_v44 }
 0x434   : > { %v2588_v48 = vpack.c.bf16 %v2582_v39, %v2582_v39  ;;  %3535 = vmatpush3.bf16.msra.mxu1 %v3937_v43 }
 0x436   : > { %3092 = vmatprep.mubr.bf16.mxu1 %v2588_v48 }
 0x437   : > { %3093 = vmatmul.mubr.bf16.vlgmr.msra.gmra.mrb[28].mxu1 %v2587_v47 }
 0x4ea   : > { %v3492_v56 = vpop.f32.mrb[24].mxu1  ;;  %v3514_v55 = vpop.f32.mrb[40].mxu0 }
 0x4eb   : > { %v3493_v22 = vpop.f32.mrb[25].mxu1  ;;  %v3515_v61 = vpop.f32.mrb[41].mxu0 }
 0x4ec   : > { %v3494_v50 = vadd.f32 %v3493_v22, %v3492_v56  ;;  %v3516_v51 = vadd.f32 %v3515_v61, %v3514_v55  ;;  %v3495_v5 = vpop.f32.mrb[26].mxu1  ;;  %v3517_v52 = vpop.f32.mrb[42].mxu0 }
 0x4ed   : > { %v3496_v53 = vpop.f32.mrb[27].mxu1  ;;  %v3518_v25 = vpop.f32.mrb[43].mxu0 }
 0x4ee   : > { %v3015_v3 = vadd.f32 %v3494_v50, %v3417_v17 }
 0x4f0   : > { %v3055_v54 = vadd.f32 %v3516_v51, %v3015_v3 }
 0x50a   : > { %v3536_v57 = vpop.f32.mrb[28].mxu1 }
 0x50b   : > { %v3537_v9 = vpop.f32.mrb[29].mxu1 }
 0x50c   : > { %v3538_v14 = vadd.f32 %v3537_v9, %v3536_v57  ;;  %v3539_v0 = vpop.f32.mrb[30].mxu1 }
 0x50d   : > { %v3540_v26 = vpop.f32.mrb[31].mxu1 }
 0x50e   : > { %v3095_v58 = vadd.f32 %v3538_v14, %v3055_v54 }
 0x510   : > { %3100 = vst [vmem:[%s308_s26] sm:$0xff] %v3095_v58 }
 0x511 PF: > { %s19_s24 = sadd.s32 1, %s4008_s24  }
 0x512   : > { %p16_p10 = scmp.ge.s32.totalorder %s19_s24, 4  }
 0x514   :  { %18 = sbr.rel (!%p16_p10) target bundleno = 2 (0x2), region = 90 }
 0x51b   :  { %3120 = vsyncpa [#allocation3], 1 }
 0x51c   :  { %3122 = vsyncpa [#allocation3 + $0x1], 1 }
 0x51d   :  { %3123 = vsyncpa [#allocation5], 1 }

</bundles_post_ra>
